<compile_context>
chip_gen: v6e
topology: v6e:2x2x1
jax: 0.10.0
libtpu: 0.0.40
codegen_flags: <defaults>
</compile_context>

<pallas_src>
import jax
import jax.numpy as jnp
from jax.experimental import pallas as pl
from jax.experimental.pallas import tpu as pltpu

EPS = 1e-6


def _flow_attention_kernel(q_ref, k_ref, v_ref, o_ref):
    # q_ref: (1, L, H, D), k_ref: (1, S, H, D), v_ref: (1, S, H, Dv)
    # o_ref: (1, L, H, Dv)
    L = q_ref.shape[1]
    S = k_ref.shape[1]
    mm_dtype = q_ref.dtype  # dtype fed to the MXU (bf16 stays bf16, f32 stays f32)

    # Head-major relayout in VMEM (lane/minor dim unchanged).
    q_in = pltpu.einshape("lhd->hld", q_ref[0])   # (H, L, D)
    k_in = pltpu.einshape("shd->hsd", k_ref[0])   # (H, S, D)
    v_in = pltpu.einshape("she->hse", v_ref[0])   # (H, S, Dv)

    # kernel_method = sigmoid, in f32 (v5e VPU/EUP have no bf16 path anyway).
    qf = jax.nn.sigmoid(q_in.astype(jnp.float32))  # (H, L, D)
    kf = jax.nn.sigmoid(k_in.astype(jnp.float32))  # (H, S, D)
    vf = v_in.astype(jnp.float32)                  # (H, S, Dv)

    # Hoisted epsilon-shifted copies (reused twice each).
    qe = qf + EPS                                  # (H, L, D)
    ke = kf + EPS                                  # (H, S, D)

    k_sum = jnp.sum(kf, axis=1, keepdims=True) + EPS   # (H, 1, D)
    q_sum = jnp.sum(qf, axis=1, keepdims=True) + EPS   # (H, 1, D)

    # normalizer_row / normalizer_col as VPU broadcast-mul + lane reduction
    # (no N=1 MXU dots).
    nr = 1.0 / jnp.sum(qe * k_sum, axis=-1, keepdims=True)   # (H, L, 1)
    nc = 1.0 / jnp.sum(ke * q_sum, axis=-1, keepdims=True)   # (H, S, 1)

    k_nc_sum = jnp.sum(kf * nc, axis=1, keepdims=True) + EPS  # (H, 1, D)
    q_nr_sum = jnp.sum(qf * nr, axis=1, keepdims=True) + EPS  # (H, 1, D)

    # Refined row normalizer.
    nrr = jnp.sum(qe * k_nc_sum, axis=-1, keepdims=True)       # (H, L, 1)
    nrr = jax.nn.sigmoid(nrr * (float(L) / float(S)))

    # Refined column normalizer: lane-major (H, S) so the softmax reduction is
    # a lane-wise reduce and exp runs at full lane density.
    ncr = jnp.sum(ke * q_nr_sum, axis=-1)                      # (H, S)
    ncr = jax.nn.softmax(ncr, axis=-1) * float(S)              # (H, S)

    v_scaled = vf * ncr[:, :, None]                            # (H, S, Dv)

    # kv[h] = K[h]^T @ (V[h] * ncr[h]) without materializing K^T:
    # batched dot_general contracting dim 1 (S) of both operands.
    kv = jax.lax.dot_general(
        kf.astype(mm_dtype), v_scaled.astype(mm_dtype),
        dimension_numbers=(((1,), (1,)), ((0,), (0,))),
        preferred_element_type=jnp.float32)                    # (H, D, Dv)

    # out[h] = Q[h] @ kv[h], f32 accumulation.
    out = jax.lax.dot_general(
        qf.astype(mm_dtype), kv.astype(mm_dtype),
        dimension_numbers=(((2,), (1,)), ((0,), (0,))),
        preferred_element_type=jnp.float32)                    # (H, L, Dv)

    # Fused row scale (nr * nrr) applied once.
    out = out * (nr * nrr)                                     # (H, L, Dv)

    # Back to the module's output layout for a contiguous HBM write.
    o_ref[0] = pltpu.einshape("hle->lhe", out.astype(o_ref.dtype))


def flow_attention(queries, keys, values, attn_mask=None, tau=None, delta=None):
    """queries: (B, L, H, D), keys/values: (B, S, H, D/Dv). Returns ((B, L, H, Dv), None)."""
    B, L, H, D = queries.shape
    _, S, _, Dv = values.shape

    out = pl.pallas_call(
        _flow_attention_kernel,
        out_shape=jax.ShapeDtypeStruct((B, L, H, Dv), queries.dtype),
        grid_spec=pltpu.PrefetchScalarGridSpec(
            num_scalar_prefetch=0,
            grid=(B,),  # one batch element (all heads) per step; even grid for v7x's 2 TCs
            in_specs=[
                pl.BlockSpec((1, L, H, D), lambda b: (b, 0, 0, 0)),
                pl.BlockSpec((1, S, H, D), lambda b: (b, 0, 0, 0)),
                pl.BlockSpec((1, S, H, Dv), lambda b: (b, 0, 0, 0)),
            ],
            out_specs=pl.BlockSpec((1, L, H, Dv), lambda b: (b, 0, 0, 0)),
        ),
        compiler_params=pltpu.CompilerParams(
            dimension_semantics=("parallel",)),
    )(queries, keys, values)

    return out, None


def _flow_attention_ref(queries, keys, values):
    """Pure-JAX reference mirroring the PyTorch forward, for validation."""
    q = jnp.transpose(queries, (0, 2, 1, 3))
    k = jnp.transpose(keys, (0, 2, 1, 3))
    v = jnp.transpose(values, (0, 2, 1, 3))
    q = jax.nn.sigmoid(q)
    k = jax.nn.sigmoid(k)
    nr = 1.0 / jnp.einsum('nhld,nhd->nhl', q + EPS, jnp.sum(k, axis=2) + EPS)
    nc = 1.0 / jnp.einsum('nhsd,nhd->nhs', k + EPS, jnp.sum(q, axis=2) + EPS)
    nrr = jnp.einsum('nhld,nhd->nhl', q + EPS,
                     jnp.sum(k * nc[..., None], axis=2) + EPS)
    ncr = jnp.einsum('nhsd,nhd->nhs', k + EPS,
                     jnp.sum(q * nr[..., None], axis=2) + EPS)
    nrr = jax.nn.sigmoid(nrr * (float(q.shape[2]) / float(k.shape[2])))
    ncr = jax.nn.softmax(ncr, axis=-1) * k.shape[2]
    kv = jnp.einsum('nhsd,nhse->nhde', k, v * ncr[..., None])
    x = jnp.einsum('nhld,nhde->nhle', q, kv) * nr[..., None] * nrr[..., None]
    return jnp.transpose(x, (0, 2, 1, 3))


if __name__ == "__main__":
    B, L, S, H, D = 2, 16, 8, 4, 32
    key = jax.random.PRNGKey(0)
    kq, kk, kv = jax.random.split(key, 3)
    queries = jax.random.normal(kq, (B, L, H, D), dtype=jnp.float32)
    keys = jax.random.normal(kk, (B, S, H, D), dtype=jnp.float32)
    values = jax.random.normal(kv, (B, S, H, D), dtype=jnp.float32)

    out, attn = flow_attention(queries, keys, values, attn_mask=None)
    out = jax.block_until_ready(out)

    ref = _flow_attention_ref(queries, keys, values)
    assert out.shape == (B, L, H, D)
    assert attn is None
    assert jnp.allclose(out, ref, atol=1e-4, rtol=1e-4), "mismatch vs reference"

    print("KERNEL_OK")
</pallas_src>

<mosaic_0001>
module attributes {stable_mosaic.version = 11 : i64} {
  func.func @_flow_attention_kernel(%arg0: i32, %arg1: memref<1x16x4x32xf32, #tpu.memory_space<vmem>>, %arg2: memref<1x8x4x32xf32, #tpu.memory_space<vmem>>, %arg3: memref<1x8x4x32xf32, #tpu.memory_space<vmem>>, %arg4: memref<1x16x4x32xf32, #tpu.memory_space<vmem>>) attributes {dimension_semantics = [#tpu.dimension_semantics<parallel>], iteration_bounds = array<i64: 2>, scalar_prefetch = 0 : i64, scratch_operands = 0 : i64, tpu.core_type = #tpu.core_type<tc>, window_params = [{transform_indices = @transform_0, window_bounds = array<i64: 1, 16, 4, 32>}, {transform_indices = @transform_1, window_bounds = array<i64: 1, 8, 4, 32>}, {transform_indices = @transform_2, window_bounds = array<i64: 1, 8, 4, 32>}, {transform_indices = @transform_3, window_bounds = array<i64: 1, 16, 4, 32>}]} {
    %c0 = arith.constant 0 : index
    %c0_0 = arith.constant 0 : index
    %c0_1 = arith.constant 0 : index
    %c0_2 = arith.constant 0 : index
    %0 = vector.load %arg1[%c0, %c0_0, %c0_1, %c0_2] : memref<1x16x4x32xf32, #tpu.memory_space<vmem>>, vector<1x16x4x32xf32>
    %1 = vector.shape_cast %0 : vector<1x16x4x32xf32> to vector<16x4x32xf32>
    %2 = tpu.transpose %1, [1, 0, 2] : vector<16x4x32xf32> -> vector<4x16x32xf32>
    %c0_3 = arith.constant 0 : index
    %c0_4 = arith.constant 0 : index
    %c0_5 = arith.constant 0 : index
    %c0_6 = arith.constant 0 : index
    %3 = vector.load %arg2[%c0_3, %c0_4, %c0_5, %c0_6] : memref<1x8x4x32xf32, #tpu.memory_space<vmem>>, vector<1x8x4x32xf32>
    %4 = vector.shape_cast %3 : vector<1x8x4x32xf32> to vector<8x4x32xf32>
    %5 = tpu.transpose %4, [1, 0, 2] : vector<8x4x32xf32> -> vector<4x8x32xf32>
    %c0_7 = arith.constant 0 : index
    %c0_8 = arith.constant 0 : index
    %c0_9 = arith.constant 0 : index
    %c0_10 = arith.constant 0 : index
    %6 = vector.load %arg3[%c0_7, %c0_8, %c0_9, %c0_10] : memref<1x8x4x32xf32, #tpu.memory_space<vmem>>, vector<1x8x4x32xf32>
    %7 = vector.shape_cast %6 : vector<1x8x4x32xf32> to vector<8x4x32xf32>
    %8 = tpu.transpose %7, [1, 0, 2] : vector<8x4x32xf32> -> vector<4x8x32xf32>
    %9 = arith.negf %2 : vector<4x16x32xf32>
    %10 = math.exp %9 : vector<4x16x32xf32>
    %cst = arith.constant 1.000000e+00 : f32
    %11 = vector.broadcast %cst : f32 to vector<4x16x32xf32>
    %12 = arith.addf %11, %10 : vector<4x16x32xf32>
    %13 = arith.divf %11, %12 : vector<4x16x32xf32>
    %14 = arith.negf %5 : vector<4x8x32xf32>
    %15 = math.exp %14 : vector<4x8x32xf32>
    %cst_11 = arith.constant 1.000000e+00 : f32
    %16 = vector.broadcast %cst_11 : f32 to vector<4x8x32xf32>
    %17 = arith.addf %16, %15 : vector<4x8x32xf32>
    %18 = arith.divf %16, %17 : vector<4x8x32xf32>
    %cst_12 = arith.constant 9.99999997E-7 : f32
    %19 = vector.broadcast %cst_12 : f32 to vector<4x16x32xf32>
    %20 = arith.addf %13, %19 : vector<4x16x32xf32>
    %cst_13 = arith.constant 9.99999997E-7 : f32
    %21 = vector.broadcast %cst_13 : f32 to vector<4x8x32xf32>
    %22 = arith.addf %18, %21 : vector<4x8x32xf32>
    %cst_14 = arith.constant dense<0.000000e+00> : vector<4x32xf32>
    %23 = vector.multi_reduction <add>, %18, %cst_14 [1] : vector<4x8x32xf32> to vector<4x32xf32>
    %24 = vector.shape_cast %23 : vector<4x32xf32> to vector<4x1x32xf32>
    %cst_15 = arith.constant 9.99999997E-7 : f32
    %25 = vector.broadcast %cst_15 : f32 to vector<4x1x32xf32>
    %26 = arith.addf %24, %25 : vector<4x1x32xf32>
    %cst_16 = arith.constant dense<0.000000e+00> : vector<4x32xf32>
    %27 = vector.multi_reduction <add>, %13, %cst_16 [1] : vector<4x16x32xf32> to vector<4x32xf32>
    %28 = vector.shape_cast %27 : vector<4x32xf32> to vector<4x1x32xf32>
    %cst_17 = arith.constant 9.99999997E-7 : f32
    %29 = vector.broadcast %cst_17 : f32 to vector<4x1x32xf32>
    %30 = arith.addf %28, %29 : vector<4x1x32xf32>
    %31 = vector.broadcast %26 : vector<4x1x32xf32> to vector<4x16x32xf32>
    %32 = arith.mulf %20, %31 : vector<4x16x32xf32>
    %cst_18 = arith.constant dense<0.000000e+00> : vector<4x16xf32>
    %33 = vector.multi_reduction <add>, %32, %cst_18 [2] : vector<4x16x32xf32> to vector<4x16xf32>
    %34 = vector.shape_cast %33 : vector<4x16xf32> to vector<4x16x1xf32>
    %cst_19 = arith.constant 1.000000e+00 : f32
    %35 = vector.broadcast %cst_19 : f32 to vector<4x16x1xf32>
    %36 = arith.divf %35, %34 : vector<4x16x1xf32>
    %37 = vector.broadcast %30 : vector<4x1x32xf32> to vector<4x8x32xf32>
    %38 = arith.mulf %22, %37 : vector<4x8x32xf32>
    %cst_20 = arith.constant dense<0.000000e+00> : vector<4x8xf32>
    %39 = vector.multi_reduction <add>, %38, %cst_20 [2] : vector<4x8x32xf32> to vector<4x8xf32>
    %40 = vector.shape_cast %39 : vector<4x8xf32> to vector<4x8x1xf32>
    %cst_21 = arith.constant 1.000000e+00 : f32
    %41 = vector.broadcast %cst_21 : f32 to vector<4x8x1xf32>
    %42 = arith.divf %41, %40 : vector<4x8x1xf32>
    %43 = vector.broadcast %42 : vector<4x8x1xf32> to vector<4x8x32xf32>
    %44 = arith.mulf %18, %43 : vector<4x8x32xf32>
    %cst_22 = arith.constant dense<0.000000e+00> : vector<4x32xf32>
    %45 = vector.multi_reduction <add>, %44, %cst_22 [1] : vector<4x8x32xf32> to vector<4x32xf32>
    %46 = vector.shape_cast %45 : vector<4x32xf32> to vector<4x1x32xf32>
    %cst_23 = arith.constant 9.99999997E-7 : f32
    %47 = vector.broadcast %cst_23 : f32 to vector<4x1x32xf32>
    %48 = arith.addf %46, %47 : vector<4x1x32xf32>
    %49 = vector.broadcast %36 : vector<4x16x1xf32> to vector<4x16x32xf32>
    %50 = arith.mulf %13, %49 : vector<4x16x32xf32>
    %cst_24 = arith.constant dense<0.000000e+00> : vector<4x32xf32>
    %51 = vector.multi_reduction <add>, %50, %cst_24 [1] : vector<4x16x32xf32> to vector<4x32xf32>
    %52 = vector.shape_cast %51 : vector<4x32xf32> to vector<4x1x32xf32>
    %cst_25 = arith.constant 9.99999997E-7 : f32
    %53 = vector.broadcast %cst_25 : f32 to vector<4x1x32xf32>
    %54 = arith.addf %52, %53 : vector<4x1x32xf32>
    %55 = vector.broadcast %48 : vector<4x1x32xf32> to vector<4x16x32xf32>
    %56 = arith.mulf %20, %55 : vector<4x16x32xf32>
    %cst_26 = arith.constant dense<0.000000e+00> : vector<4x16xf32>
    %57 = vector.multi_reduction <add>, %56, %cst_26 [2] : vector<4x16x32xf32> to vector<4x16xf32>
    %58 = vector.shape_cast %57 : vector<4x16xf32> to vector<4x16x1xf32>
    %cst_27 = arith.constant 2.000000e+00 : f32
    %59 = vector.broadcast %cst_27 : f32 to vector<4x16x1xf32>
    %60 = arith.mulf %58, %59 : vector<4x16x1xf32>
    %61 = arith.negf %60 : vector<4x16x1xf32>
    %62 = math.exp %61 : vector<4x16x1xf32>
    %cst_28 = arith.constant 1.000000e+00 : f32
    %63 = vector.broadcast %cst_28 : f32 to vector<4x16x1xf32>
    %64 = arith.addf %63, %62 : vector<4x16x1xf32>
    %65 = arith.divf %63, %64 : vector<4x16x1xf32>
    %66 = vector.broadcast %54 : vector<4x1x32xf32> to vector<4x8x32xf32>
    %67 = arith.mulf %22, %66 : vector<4x8x32xf32>
    %cst_29 = arith.constant dense<0.000000e+00> : vector<4x8xf32>
    %68 = vector.multi_reduction <add>, %67, %cst_29 [2] : vector<4x8x32xf32> to vector<4x8xf32>
    %cst_30 = arith.constant dense<0xFF800000> : vector<4xf32>
    %69 = vector.multi_reduction <maximumf>, %68, %cst_30 [1] : vector<4x8xf32> to vector<4xf32>
    %cst_31 = arith.constant 0xFF800000 : f32
    %70 = vector.broadcast %cst_31 : f32 to vector<4xf32>
    %71 = arith.maximumf %70, %69 : vector<4xf32>
    %72 = vector.shape_cast %71 : vector<4xf32> to vector<4x1xf32>
    %73 = vector.broadcast %72 : vector<4x1xf32> to vector<4x8xf32>
    %74 = arith.subf %68, %73 : vector<4x8xf32>
    %75 = math.exp %74 : vector<4x8xf32>
    %cst_32 = arith.constant dense<0.000000e+00> : vector<4xf32>
    %76 = vector.multi_reduction <add>, %75, %cst_32 [1] : vector<4x8xf32> to vector<4xf32>
    %77 = vector.shape_cast %76 : vector<4xf32> to vector<4x1xf32>
    %78 = vector.broadcast %77 : vector<4x1xf32> to vector<4x8xf32>
    %79 = arith.divf %75, %78 : vector<4x8xf32>
    %cst_33 = arith.constant 8.000000e+00 : f32
    %80 = vector.broadcast %cst_33 : f32 to vector<4x8xf32>
    %81 = arith.mulf %79, %80 : vector<4x8xf32>
    %82 = vector.shape_cast %81 : vector<4x8xf32> to vector<4x8x1xf32>
    %83 = vector.broadcast %82 : vector<4x8x1xf32> to vector<4x8x32xf32>
    %84 = arith.mulf %8, %83 : vector<4x8x32xf32>
    %cst_34 = arith.constant dense<0.000000e+00> : vector<4x32x32xf32>
    %85 = tpu.matmul %18, %84, %cst_34 {dimension_numbers = #tpu.dot_dimension_numbers<[1], [1], [2], [2], [0, 0, 0, 2, 1, 2], [0], [0]>} : vector<4x8x32xf32>, vector<4x8x32xf32>, vector<4x32x32xf32> -> vector<4x32x32xf32>
    %cst_35 = arith.constant dense<0.000000e+00> : vector<4x16x32xf32>
    %86 = tpu.matmul %13, %85, %cst_35 {dimension_numbers = #tpu.dot_dimension_numbers<[2], [1], [1], [2], [0, 0, 0, 1, 1, 2], [0], [0]>} : vector<4x16x32xf32>, vector<4x32x32xf32>, vector<4x16x32xf32> -> vector<4x16x32xf32>
    %87 = arith.mulf %36, %65 : vector<4x16x1xf32>
    %88 = vector.broadcast %87 : vector<4x16x1xf32> to vector<4x16x32xf32>
    %89 = arith.mulf %86, %88 : vector<4x16x32xf32>
    %90 = tpu.transpose %89, [1, 0, 2] : vector<4x16x32xf32> -> vector<16x4x32xf32>
    %c0_36 = arith.constant 0 : index
    %c0_37 = arith.constant 0 : index
    %c0_38 = arith.constant 0 : index
    %c0_39 = arith.constant 0 : index
    %91 = vector.load %arg4[%c0_36, %c0_37, %c0_38, %c0_39] : memref<1x16x4x32xf32, #tpu.memory_space<vmem>>, vector<1x16x4x32xf32>
    %92 = vector.shape_cast %91 : vector<1x16x4x32xf32> to vector<16x4x32xf32>
    %93 = vector.shape_cast %90 : vector<16x4x32xf32> to vector<1x16x4x32xf32>
    tpu.vector_store %arg4[%c0_36, %c0_37, %c0_38, %c0_39], %93 {strides = array<i32>} : memref<1x16x4x32xf32, #tpu.memory_space<vmem>>, vector<1x16x4x32xf32>,
    return
  }
  func.func @transform_0(%arg0: i32) -> (i32, i32, i32, i32) {
    %c0_i32 = arith.constant 0 : i32
    %c0_i32_0 = arith.constant 0 : i32
    %c0_i32_1 = arith.constant 0 : i32
    %c0_i32_2 = arith.constant 0 : i32
    return %arg0, %c0_i32, %c0_i32_0, %c0_i32_1 : i32, i32, i32, i32
  }
  func.func @transform_1(%arg0: i32) -> (i32, i32, i32, i32) {
    %c0_i32 = arith.constant 0 : i32
    %c0_i32_0 = arith.constant 0 : i32
    %c0_i32_1 = arith.constant 0 : i32
    %c0_i32_2 = arith.constant 0 : i32
    return %arg0, %c0_i32, %c0_i32_0, %c0_i32_1 : i32, i32, i32, i32
  }
  func.func @transform_2(%arg0: i32) -> (i32, i32, i32, i32) {
    %c0_i32 = arith.constant 0 : i32
    %c0_i32_0 = arith.constant 0 : i32
    %c0_i32_1 = arith.constant 0 : i32
    %c0_i32_2 = arith.constant 0 : i32
    return %arg0, %c0_i32, %c0_i32_0, %c0_i32_1 : i32, i32, i32, i32
  }
  func.func @transform_3(%arg0: i32) -> (i32, i32, i32, i32) {
    %c0_i32 = arith.constant 0 : i32
    %c0_i32_0 = arith.constant 0 : i32
    %c0_i32_1 = arith.constant 0 : i32
    %c0_i32_2 = arith.constant 0 : i32
    return %arg0, %c0_i32, %c0_i32_0, %c0_i32_1 : i32, i32, i32, i32
  }
}

</mosaic_0001>

<bundles_post_ra>
// kernel: tpu_custom_call.1
= control target key start
LH: loop header
LB: loop body
LE: loop exit
PB: predicated region body
PF: predicated region fallthrough
CT: control target
= control target key end

     0   :  { %s3503_s0 = inlined_call_operand.hbm [shape: f32[2,16,4,32], index: 0, kind: input, shape index: {}]   ;;  %s3504_s1 = inlined_call_operand.hbm [shape: f32[2,8,4,32], index: 1, kind: input, shape index: {}]   ;;  %s3505_s2 = inlined_call_operand.hbm [shape: f32[2,8,4,32], index: 2, kind: input, shape index: {}]   ;;  %s3506_s3 = inlined_call_operand.hbm [shape: f32[2,16,4,32], index: 3, kind: output, shape index: {}]  }
   0x1   :  { %3513 = sst [smem:[#allocation13_spill]] %s3504_s1 }
   0x2   :  { %8 = vsyncpa [#allocation3], 0 }
   0x3   :  { %10 = vsyncpa [#allocation3 + $0x1], 0 }
   0x4   :  { %11 = vsyncpa [#allocation6], 0 }
   0x5   :  { %13 = vsyncpa [#allocation6 + $0x1], 0 }
   0x6   :  { %14 = vsyncpa [#allocation4], 0 }
   0x7   :  { %16 = vsyncpa [#allocation4 + $0x1], 0  ;;  %s2867_s12 = smov 0   ;;  %s2869_s13 = smov 0  }
   0x8   :  { %s2871_s14 = smov 0   ;;  %s2873_s15 = smov 0  }
   0x9 LB: > { %s2888_s16 = sadd.s32 4294967295, %s2833_s15   ;;  %s2289_s17 = sadd.s32 4294967294, %s2833_s15   ;;  %s2833_s15 = sphi %s2873_s15, %s3533_s15   ;;  %s2829_s14 = sphi %s2871_s14, %s3532_s14   ;;  %s2825_s13 = sphi %s2869_s13, %s3531_s13   ;;  %s2821_s12 = sphi %s2867_s12, %s3530_s12  }
   0xa   : > { %s2892_s18 = sadd.s32 1, %s2833_s15   ;;  %s29_s19 = sadd.s32 1, %s2829_s14 }
   0xb   : > { %s26_s20 = ssub.s32 %s2833_s15, %s2892_s18  ;;  %p36_p0 = scmp.ne.s32.totalorder %s2829_s14, %s2825_s13 }
   0xc   : > { %p27_p1 = scmp.eq.s32.totalorder %s26_s20, 0  ;;  %p37_p2 = scmp.eq.s32.totalorder %s2833_s15, 0 }
   0xd   : > { %p42_p3 = scmp.ne.s32.totalorder %s2825_s13, %s2821_s12  ;;  %p43_p4 = scmp.eq.s32.totalorder %s2888_s16, 0 }
   0xe   : > { %s2904_s21 = scalar_select %p27_p1, %s2829_s14, %s29_s19  }
   0xf   : > { %p38_p5 = por %p37_p2, %p36_p0  ;;  %p2906_p6 = por %p43_p4, %p42_p3 }
  0x10   : > { %3514 = sst [smem:[#allocation12_spill]] %s2904_s21  ;;  %p118_p7 = scmp.eq.s32.totalorder %s2888_s16, 1 }
  0x11   : > { %s3515_s22 = scalar_select %p2906_p6, 1, 0 }
  0x12   : > { %p124_p8 = scmp.eq.s32.totalorder %s2289_s17, 1  ;;  %p2501_p10 = scmp.lt.s32.totalorder %s2833_s15, 2 }
  0x13   : > { %p2913_p11 = por %p118_p7, %p36_p0  ;;  %s2922_s25 = sand.u32 1, %s2829_s14  }
  0x14   : > { %p2917_p12 = por %p124_p8, %p42_p3  ;;  %p2924_p13 = pnand %p2501_p10, %p38_p5 }
  0x15   : > { %s3516_s23 = scalar_select %p2913_p11, 1, 0 }
  0x16   : > { %s3517_s24 = scalar_select %p2917_p12, 1, 0 }
  0x17   : > { %s165_s27 = sand.u32 1, %s2833_s15   ;;  %s2295_s28 = sshll.u32 %s2922_s25, 5 }
  0x18   : > { %s2356_s29 = sshll.u32 %s2833_s15, 9  ;;  %s3519_s1 = sld [smem:[#allocation13_spill]] }
  0x19   : > { %s169_s6 = scalar_lea.vmem [#allocation5], %s2295_s28  ;;  %s2942_s8 = scalar_lea.sflag [#allocation6], %s165_s27 }
  0x1a   : > { %s176_s7 = sshll.u32 %s169_s6, 4  ;;  %p2948_p1 = pneg %p2924_p13  ;;  %s2940_s7 = int_to_ptr.vmem [resolvable:$true] %s176_s7 }
  0x1e   : > { %s2936_s5 = scalar_lea.hbm %s3519_s1, %s2356_s29  ;;  %s2686_s19 = scalar_lea.hbm %s3519_s1, 1024 }
  0x1f   : > { %s2681_s9 = scalar_lea.hbm %s2936_s5, 512  ;;  %p2687_p4 = scmp.lt.s32.totalorder %s2936_s5, %s3519_s1 }
  0x20   : > { %p2682_p0 = scmp.ne.s32.totalorder %s2936_s5, %s2681_s9  ;;  %p2688_p5 = scmp.lt.s32.totalorder %s2686_s19, %s2681_s9 }
  0x22   : > { %p2684_p2 = pnand %p2948_p1, %p2682_p0  ;;  %p2689_p7 = por %p2688_p5, %p2687_p4 }
  0x24   : > { %p2685_p3 = pneg %p2684_p2 }
  0x26   : > { %p2690_p8 = pnand %p2689_p7, %p2685_p3 }
  0x28   : > { %2693 = shalt.err (!%p2690_p8)
}
  0x29   : > { %s2694_s27 = scalar_lea.vmem %s2940_s7, 512  ;;  %s2835_s4 = smov [#allocation5]  }
  0x2a   : > { %p2695_p10 = scmp.ne.s32.totalorder %s2940_s7, %s2694_s27  ;;  %s2699_s6 = sshll.u32 %s2835_s4, 4  ;;  %s2700_s6 = int_to_ptr.vmem [resolvable:$false] %s2699_s6 }
  0x2b   : > { %s2701_s11 = scalar_lea.vmem %s2700_s6, 1024  ;;  %p2702_p9 = scmp.lt.s32.totalorder %s2940_s7, %s2700_s6 }
  0x2c   : > { %p2697_p0 = pnand %p2695_p10, %p2948_p1  ;;  %p2703_p12 = scmp.lt.s32.totalorder %s2701_s11, %s2694_s27 }
  0x2e   : > { %p2698_p2 = pneg %p2697_p0  ;;  %p2704_p11 = por %p2703_p12, %p2702_p9 }
  0x30   : > { %p2705_p6 = pnand %p2704_p11, %p2698_p2 }
  0x32   : > { %2708 = shalt.err (!%p2705_p6)
}
  0x33   : > { %s3509_s9 = smov 64   ;;  %s3511_s17 = smov 4  }
  0x34   : > { %2493 = dma.hbm_to_vmem [thread:$0]  (!%p2924_p13), %s2936_s5, 512, %s2940_s7, %s2942_s8, %s3509_s9, %s3509_s9, %s3511_s17  }
  0x35   : > { %s2979_s30 = scalar_lea.hbm %s3505_s2, %s2356_s29  ;;  %s190_s27 = scalar_lea.vmem [#allocation7], %s2295_s28 }
  0x36   : > { %s197_s4 = sshll.u32 %s190_s27, 4  ;;  %p2301_p6 = scmp.ge.s32.totalorder %s2833_s15, 1  ;;  %s2983_s4 = int_to_ptr.vmem [resolvable:$true] %s197_s4 }
  0x37   : > { %p205_p9 = scmp.lt.s32.totalorder %s2833_s15, 3  ;;  %s2292_s6 = sshll.u32 %s2922_s25, 6 }
  0x38   : > { %s2355_s11 = sshll.u32 %s2833_s15, 10  ;;  %s148_s28 = scalar_lea.vmem [#allocation2], %s2292_s6 }
  0x39   : > { %p2989_p11 = pnand %p2301_p6, %p205_p9  ;;  %s2996_s19 = scalar_lea.hbm %s3503_s0, %s2355_s11 }
  0x3a   : > { %s155_s29 = sshll.u32 %s148_s28, 4  ;;  %s145_s20 = scalar_lea.sflag [#allocation3], %s2922_s25  ;;  %s2998_s29 = int_to_ptr.vmem [resolvable:$true] %s155_s29 }
  0x3b   : > { %s3521_s1 = scalar_select %p2989_p11, 1, 0 }
  0x3c   : > { %s2709_s27 = scalar_lea.hbm %s2996_s19, 1024  ;;  %s2714_s21 = scalar_lea.hbm %s3503_s0, 2048 }
  0x3d   : > { %p2710_p12 = scmp.ne.s32.totalorder %s2996_s19, %s2709_s27  ;;  %p2715_p5 = scmp.lt.s32.totalorder %s2996_s19, %s3503_s0 }
  0x3e   : > { %p2716_p7 = scmp.lt.s32.totalorder %s2714_s21, %s2709_s27 }
  0x3f   : > { %p2712_p3 = pnand %p2710_p12, %p2948_p1 }
  0x40   : > { %p2717_p8 = por %p2716_p7, %p2715_p5 }
  0x41   : > { %p2713_p4 = pneg %p2712_p3 }
  0x43   : > { %p2718_p10 = pnand %p2717_p8, %p2713_p4 }
  0x45   : > { %2721 = shalt.err (!%p2718_p10)
}
  0x46   : > { %s2722_s25 = scalar_lea.vmem %s2998_s29, 1024  ;;  %s2838_s6 = smov [#allocation2]  }
  0x47   : > { %p2723_p0 = scmp.ne.s32.totalorder %s2998_s29, %s2722_s25  ;;  %s2727_s9 = sshll.u32 %s2838_s6, 4  ;;  %s2728_s9 = int_to_ptr.vmem [resolvable:$false] %s2727_s9 }
  0x48   : > { %s2729_s17 = scalar_lea.vmem %s2728_s9, 2048  ;;  %p2730_p9 = scmp.lt.s32.totalorder %s2998_s29, %s2728_s9 }
  0x49   : > { %p2725_p2 = pnand %p2723_p0, %p2948_p1  ;;  %p2731_p12 = scmp.lt.s32.totalorder %s2729_s17, %s2722_s25 }
  0x4b   : > { %p2726_p6 = pneg %p2725_p2  ;;  %p2732_p3 = por %p2731_p12, %p2730_p9 }
  0x4d   : > { %p2733_p11 = pnand %p2732_p3, %p2726_p6 }
  0x4f   : > { %2736 = shalt.err (!%p2733_p11)
}
  0x50   : > { %s3522_s21 = smov 4   ;;  %s3523_s7 = smov 64  }
  0x51   : > { %2490 = dma.hbm_to_vmem [thread:$0]  (!%p2924_p13), %s2996_s19, 1024, %s2998_s29, %s145_s20, %s3523_s7, %s3523_s7, %s3522_s21  }
  0x52   : > { %s2737_s28 = scalar_lea.hbm %s2979_s30, 512  ;;  %s2742_s11 = scalar_lea.hbm %s3505_s2, 1024 }
  0x53   : > { %p2738_p4 = scmp.ne.s32.totalorder %s2979_s30, %s2737_s28  ;;  %p2743_p11 = scmp.lt.s32.totalorder %s2979_s30, %s3505_s2 }
  0x54   : > { %p2744_p8 = scmp.lt.s32.totalorder %s2742_s11, %s2737_s28 }
  0x55   : > { %p2740_p5 = pnand %p2738_p4, %p2948_p1 }
  0x56   : > { %p2745_p10 = por %p2744_p8, %p2743_p11 }
  0x57   : > { %p2741_p7 = pneg %p2740_p5 }
  0x59   : > { %p2746_p0 = pnand %p2745_p10, %p2741_p7 }
  0x5b   : > { %2749 = shalt.err (!%p2746_p0)
}
  0x5c   : > { %s2750_s19 = scalar_lea.vmem %s2983_s4, 512  ;;  %s2839_s29 = smov [#allocation7]  }
  0x5d   : > { %p2751_p2 = scmp.ne.s32.totalorder %s2983_s4, %s2750_s19  ;;  %s2755_s20 = sshll.u32 %s2839_s29, 4  ;;  %s2756_s20 = int_to_ptr.vmem [resolvable:$false] %s2755_s20 }
  0x5e   : > { %s2757_s9 = scalar_lea.vmem %s2756_s20, 1024  ;;  %p2758_p12 = scmp.lt.s32.totalorder %s2983_s4, %s2756_s20 }
  0x5f   : > { %p2753_p6 = pnand %p2751_p2, %p2948_p1  ;;  %p2759_p3 = scmp.lt.s32.totalorder %s2757_s9, %s2750_s19 }
  0x61   : > { %p2754_p9 = pneg %p2753_p6  ;;  %p2760_p4 = por %p2759_p3, %p2758_p12 }
  0x63   : > { %p2761_p5 = pnand %p2760_p4, %p2754_p9 }
  0x65   : > { %2764 = shalt.err (!%p2761_p5)
}
  0x66   : > { %2496 = dma.hbm_to_vmem [thread:$0]  (!%p2924_p13), %s2979_s30, 512, %s2983_s4, %s2942_s8, %s3523_s7, %s3523_s7, %s3522_s21  }
  0x67   : > { %p3524_p1 = scmp.ne.s32.totalorder %s3521_s1, 0 }
  0x68   : > { %s3051_s10 = sand.u32 (!%p3524_p1), 1, %s2825_s13   ;;  %p3525_p7 = scmp.ne.s32.totalorder (!%p3524_p1), %s3515_s22, 0 }
  0x69   : > { %209 = sbr.rel (%p3524_p1) target bundleno = 1582 (0x62e), region = 32  ;;  %s2302_s17 = sshll.u32 (!%p3524_p1), %s3051_s10, 6 }
  0x6a   : > { %s212_s28 = scalar_lea.sflag (!%p3524_p1), [#allocation3], %s3051_s10  ;;  %s3057_s26 = scalar_lea.vmem (!%p3524_p1), [#allocation2], %s2302_s17 }
  0x6e   : > { %2808 = dma.done.wait (%p3525_p7), %s212_s28, 1024  }
  0x6f   : > { %2810 = vsyncadd (%p3525_p7), %s212_s28, 4294966272  ;;  %s220_s1 = sand.u32 1, %s2888_s16   ;;  %s2303_s8 = sshll.u32 %s3051_s10, 5 }
  0x70   : > { %s221_s30 = scalar_lea.sflag [#allocation6], %s220_s1  ;;  %s224_s4 = scalar_lea.vmem [#allocation5], %s2303_s8 }
  0x71   : > { %2812 = dma.done.wait (%p3525_p7), %s221_s30, 1024  }
  0x72   : > { %2814 = vsyncadd (%p3525_p7), %s221_s30, 4294966272  ;;  %v2840_v0 = vmov 1983009808   ;;  %v286_v2 = vlaneseq  ;;  %v2841_v5 = vmov 1934713408   ;;  %vm654_vm0 = vcmask 261120  }
  0x73   : > { %v284_v1 = vunpack.c.l.s4 %v2840_v0  ;;  %v317_v6 = vunpack.c.l.s4 %v2841_v5  ;;  %v2545_v7 = vld [vmem:[%s3057_s26] ss:$8 sps:$4 sm:$0xff]   ;;  %v2546_v9 = vld [vmem:[%s3057_s26 + $0x4] ss:$8 sps:$4 sm:$0xff]   ;;  %v2547_v10 = vld [vmem:[%s3057_s26 + $0x10] ss:$8 sps:$4 sm:$0xff]  }
  0x74   : > { %v3072_v4 = vshrl.u32 %v286_v2, 7  ;;  %v2548_v11 = vld [vmem:[%s3057_s26 + $0x14] ss:$8 sps:$4 sm:$0xff]   ;;  %v2549_v17 = vld [vmem:[%s224_s4] ss:$8 sps:$4 sm:$0xff]   ;;  %vm1009_vm1 = vcmask 1041409  }
  0x75   : > { %v285_v3 = vunpack.c.0.s8 %v284_v1  ;;  %v318_v12 = vunpack.c.0.s8 %v317_v6  ;;  %v2550_v21 = vld [vmem:[%s224_s4 + $0x4] ss:$8 sps:$4 sm:$0xff]   ;;  %v2551_v22 = vld [vmem:[%s224_s4 + $0x10] ss:$8 sps:$4 sm:$0xff]   ;;  %v2552_v23 = vld [vmem:[%s224_s4 + $0x14] ss:$8 sps:$4 sm:$0xff]  }
  0x76   : > { %v2553_v30 = vld [vmem:[%s3057_s26 + $0x20] ss:$8 sps:$4 sm:$0xff]   ;;  %v2554_v33 = vld [vmem:[%s3057_s26 + $0x24] ss:$8 sps:$4 sm:$0xff]   ;;  %v2555_v34 = vld [vmem:[%s3057_s26 + $0x30] ss:$8 sps:$4 sm:$0xff]  }
  0x77   : > { %v3076_v8 = vsub.s32 %v285_v3, %v3072_v4  ;;  %v3086_v19 = vsub.s32 %v318_v12, %v3072_v4  ;;  %v2556_v35 = vld [vmem:[%s3057_s26 + $0x34] ss:$8 sps:$4 sm:$0xff]   ;;  %vm1011_vm2 = vcmask 1042434   ;;  %vm1013_vm3 = vcmask 1043459   ;;  %s3308_s22 = scalar_lea.vmem [#allocation7], %s2303_s8  ;;  %s2358_s21 = sshll.u32 %s2888_s16, 10 }
  0x78   : > { %vm1016_vm4 = vcmask 60416   ;;  %vm1181_vm5 = vcmask 64512   ;;  %vm2142_vm6 = vcmask 257024   ;;  %s3416_s7 = scalar_lea.vmem [#allocation8], %s2302_s17  ;;  %s3442_s11 = scalar_lea.hbm %s3506_s3, %s2358_s21 }
  0x79   : > { %v289_v13 = vrot.slane %v2545_v7, %v3076_v8  ;;  %v297_v14 = vrot.slane %v2546_v9, %v3076_v8  ;;  %v305_v15 = vrot.slane %v2547_v10, %v3076_v8  ;;  %v313_v16 = vrot.slane %v2548_v11, %v3076_v8  ;;  %s2173_s27 = sshll.u32 %s3416_s7, 4  ;;  %s2160_s25 = scalar_lea.sflag [#allocation4], %s3051_s10  ;;  %s3444_s27 = int_to_ptr.vmem [resolvable:$true] %s2173_s27 }
  0x7a   : > { %v433_v24 = vrot.slane %v2549_v17, %v3076_v8  ;;  %v441_v27 = vrot.slane %v2550_v21, %v3076_v8  ;;  %v449_v28 = vrot.slane %v2551_v22, %v3076_v8  ;;  %v457_v29 = vrot.slane %v2552_v23, %v3076_v8  ;;  %s2765_s6 = scalar_lea.vmem %s3444_s27, 1024  ;;  %p3526_p11 = scmp.ne.s32.totalorder %s3516_s23, 0 }
  0x7b   : > { %v314_v18 = vcombine.low %v289_v13, %v297_v14  ;;  %v330_v20 = vcombine.low %v305_v15, %v313_v16  ;;  %v357_v38 = vrot.slane %v2553_v30, %v3076_v8  ;;  %v315_v40 = vcombine.high %v289_v13, %v297_v14  ;;  %p2766_p13 = scmp.ne.s32.totalorder %s3444_s27, %s2765_s6  ;;  %s2844_s19 = smov [#allocation8]  }
  0x7c   : > { %v458_v32 = vcombine.low %v433_v24, %v441_v27  ;;  %v459_v36 = vcombine.high %v433_v24, %v441_v27  ;;  %v474_v37 = vcombine.low %v449_v28, %v457_v29  ;;  %v475_v39 = vcombine.high %v449_v28, %v457_v29  ;;  %s2769_s29 = sshll.u32 %s2844_s19, 4  ;;  %s2770_s29 = int_to_ptr.vmem [resolvable:$false] %s2769_s29 }
  0x7d   : > { %v322_v25 = vrot.slane %v314_v18, %v3086_v19  ;;  %v338_v26 = vrot.slane %v330_v20, %v3086_v19  ;;  %v365_v43 = vrot.slane %v2554_v33, %v3076_v8  ;;  %v331_v44 = vcombine.high %v305_v15, %v313_v16  ;;  %p2767_p8 = pnand %p2766_p13, %p3526_p11  ;;  %s2771_s20 = scalar_lea.vmem %s2770_s29, 2048 }
  0x7e   : > { %v466_v41 = vrot.slane %v458_v32, %v3086_v19  ;;  %v482_v45 = vrot.slane %v474_v37, %v3086_v19  ;;  %v373_v46 = vrot.slane %v2555_v34, %v3076_v8  ;;  %v381_v47 = vrot.slane %v2556_v35, %v3076_v8  ;;  %p2772_p0 = scmp.lt.s32.totalorder %s3444_s27, %s2770_s29  ;;  %p2773_p2 = scmp.lt.s32.totalorder %s2771_s20, %s2765_s6 }
  0x7f   : > { %v347_v31 = vcombine.high %v322_v25, %v338_v26  ;;  %v346_v42 = vcombine.low %v322_v25, %v338_v26  ;;  %v473_v48 = vrot.slane %v459_v36, %v3086_v19  ;;  %v382_v50 = vcombine.low %v357_v38, %v365_v43  ;;  %p2768_p10 = pneg %p2767_p8 }
  0x80   : > { %v383_v51 = vcombine.high %v357_v38, %v365_v43  ;;  %v489_v52 = vrot.slane %v475_v39, %v3086_v19  ;;  %v491_v53 = vcombine.high %v466_v41, %v482_v45  ;;  %v490_v54 = vcombine.low %v466_v41, %v482_v45  ;;  %p2774_p6 = por %p2773_p2, %p2772_p0 }
  0x81   : > { %v2308_v49 = vmul.f32 -1.442695, %v347_v31  ;;  %v398_v55 = vcombine.low %v373_v46, %v381_v47  ;;  %v329_v56 = vrot.slane %v315_v40, %v3086_v19  ;;  %v390_v57 = vrot.slane %v382_v50, %v3086_v19 }
  0x82   : > { %v397_v58 = vrot.slane %v383_v51, %v3086_v19  ;;  %v399_v59 = vcombine.high %v373_v46, %v381_v47  ;;  %v492_v60 = vcombine.low %v473_v48, %v489_v52  ;;  %v2315_v61 = vmul.f32 -1.442695, %v491_v53  ;;  %p2775_p9 = pnand %p2774_p6, %p2768_p10 }
  0x83   : > { %v2314_v62 = vmul.f32 -1.442695, %v490_v54  ;;  %v406_v63 = vrot.slane %v398_v55, %v3086_v19  ;;  %v345_v0 = vrot.slane %v331_v44, %v3086_v19  ;;  %2561 = vpow2.f32 %v2308_v49 }
  0x84   : > { %v2306_v1 = vmul.f32 -1.442695, %v346_v42  ;;  %v413_v3 = vrot.slane %v399_v59, %v3086_v19  ;;  %v2316_v5 = vmul.f32 -1.442695, %v492_v60  ;;  %2563 = vpow2.f32 %v2315_v61 }
  0x85   : > { %v415_v6 = vcombine.high %v390_v57, %v406_v63  ;;  %v414_v7 = vcombine.low %v390_v57, %v406_v63  ;;  %v493_v9 = vcombine.high %v473_v48, %v489_v52  ;;  %2565 = vpow2.f32 %v2314_v62 }
  0x86   : > { %v416_v10 = vcombine.low %v397_v58, %v413_v3  ;;  %2567 = vpow2.f32 %v2316_v5  ;;  %v348_v13 = vcombine.low %v329_v56, %v345_v0  ;;  %v417_v16 = vcombine.high %v397_v58, %v413_v3 }
  0x87   : > { %v2309_v11 = vmul.f32 -1.442695, %v415_v6  ;;  %v2307_v12 = vmul.f32 -1.442695, %v414_v7  ;;  %2569 = vpow2.f32 %v2306_v1  ;;  %v2317_v15 = vmul.f32 -1.442695, %v493_v9 }
  0x88   : > { %v2311_v14 = vmul.f32 -1.442695, %v416_v10  ;;  %v2310_v17 = vmul.f32 -1.442695, %v348_v13  ;;  %v349_v18 = vcombine.high %v329_v56, %v345_v0  ;;  %v2313_v20 = vmul.f32 -1.442695, %v417_v16 }
  0x89   : > { %2571 = vpow2.f32 %v2309_v11 }
  0x8a   : > { %2573 = vpow2.f32 %v2307_v12  ;;  %v2312_v21 = vmul.f32 -1.442695, %v349_v18 }
  0x8b   : > { %2575 = vpow2.f32 %v2311_v14 }
  0x8c   : > { %2577 = vpow2.f32 %v2317_v15 }
  0x8d   : > { %2579 = vpow2.f32 %v2310_v17 }
  0x8e   : > { %2581 = vpow2.f32 %v2313_v20 }
  0x8f   : > { %2583 = vpow2.f32 %v2312_v21 }
  0x90   : > { %v2562_v22 = vpop.eup %2561 }
  0x91   : > { %v2564_v23 = vpop.eup %2563  ;;  %v596_v31 = vadd.f32 1.0, %v2562_v22 }
  0x92   : > { %v2566_v24 = vpop.eup %2565  ;;  %v631_v25 = vadd.f32 1.0, %v2564_v23 }
  0x93   : > { %v2568_v26 = vpop.eup %2567  ;;  %v630_v27 = vadd.f32 1.0, %v2566_v24 }
  0x94   : > { %v2570_v28 = vpop.eup %2569  ;;  %2585 = vrcp.f32 %v631_v25  ;;  %v632_v29 = vadd.f32 1.0, %v2568_v26 }
  0x95   : > { %2587 = vrcp.f32 %v630_v27  ;;  %v594_v33 = vadd.f32 1.0, %v2570_v28 }
  0x96   : > { %v2572_v30 = vpop.eup %2571  ;;  %2589 = vrcp.f32 %v632_v29 }
  0x97   : > { %v2574_v32 = vpop.eup %2573  ;;  %v597_v36 = vadd.f32 1.0, %v2572_v30  ;;  %2591 = vrcp.f32 %v596_v31 }
  0x98   : > { %v2576_v34 = vpop.eup %2575  ;;  %v595_v37 = vadd.f32 1.0, %v2574_v32  ;;  %2593 = vrcp.f32 %v594_v33 }
  0x99   : > { %v2578_v35 = vpop.eup %2577  ;;  %v599_v40 = vadd.f32 1.0, %v2576_v34 }
  0x9a   : > { %v633_v38 = vadd.f32 1.0, %v2578_v35  ;;  %v2580_v39 = vpop.eup %2579 }
  0x9b   : > { %v2582_v41 = vpop.eup %2581  ;;  %v598_v42 = vadd.f32 1.0, %v2580_v39 }
  0x9c   : > { %2595 = vrcp.f32 %v633_v38  ;;  %v2584_v43 = vpop.eup %2583  ;;  %v601_v45 = vadd.f32 1.0, %v2582_v41 }
  0x9d   : > { %2597 = vrcp.f32 %v597_v36  ;;  %v600_v48 = vadd.f32 1.0, %v2584_v43 }
  0x9e   : > { %2599 = vrcp.f32 %v595_v37 }
  0x9f   : > { %2601 = vrcp.f32 %v599_v40 }
  0xa0   : > { %2603 = vrcp.f32 %v598_v42 }
  0xa1   : > { %v3112_v44 = vpop.eup %2585  ;;  %2605 = vrcp.f32 %v601_v45 }
  0xa2   : > { %v3114_v46 = vpop.eup %2587  ;;  %v662_v47 = vsel %vm654_vm0, %v3112_v44, 0.0  ;;  %2607 = vrcp.f32 %v600_v48 }
  0xa3   : > { %v3118_v49 = vpop.eup %2589  ;;  %v663_v50 = vrot.slane %v662_v47, 4  ;;  %v655_v51 = vsel %vm654_vm0, %v3114_v46, 0.0 }
  0xa4   : > { %v656_v52 = vrot.slane %v655_v51, 4  ;;  %v669_v53 = vsel %vm654_vm0, %v3118_v49, 0.0  ;;  %v3124_v57 = vpop.eup %2591 }
  0xa5   : > { %v664_v54 = vadd.f32 %v663_v50, %v662_v47  ;;  %v670_v55 = vrot.slane %v669_v53, 4  ;;  %v3126_v60 = vpop.eup %2593  ;;  %v3137_v11 = vadd.f32 1e-06, %v3124_v57 }
  0xa6   : > { %v657_v56 = vadd.f32 %v656_v52, %v655_v51  ;;  %v3145_v18 = vadd.f32 1e-06, %v3126_v60 }
  0xa7   : > { %v665_v58 = vrot.slane %v664_v54, 2  ;;  %v671_v59 = vadd.f32 %v670_v55, %v669_v53 }
  0xa8   : > { %v658_v61 = vrot.slane %v657_v56, 2 }
  0xa9   : > { %v3128_v62 = vpop.eup %2595  ;;  %v666_v63 = vadd.f32 %v665_v58, %v664_v54  ;;  %v672_v0 = vrot.slane %v671_v59, 2 }
  0xaa   : > { %v3130_v1 = vpop.eup %2597  ;;  %v659_v3 = vadd.f32 %v658_v61, %v657_v56  ;;  %v676_v5 = vsel %vm654_vm0, %v3128_v62, 0.0 }
  0xab   : > { %v3134_v6 = vpop.eup %2599  ;;  %v667_v7 = vrot.slane %v666_v63, 1  ;;  %v673_v9 = vadd.f32 %v672_v0, %v671_v59  ;;  %v677_v10 = vrot.slane %v676_v5, 4  ;;  %v3142_v15 = vadd.f32 1e-06, %v3130_v1 }
  0xac   : > { %v660_v12 = vrot.slane %v659_v3, 1  ;;  %v3139_v13 = vpop.eup %2601  ;;  %v3148_v21 = vadd.f32 1e-06, %v3134_v6 }
  0xad   : > { %v668_v14 = vadd.f32 %v667_v7, %v666_v63  ;;  %v674_v16 = vrot.slane %v673_v9, 1  ;;  %v678_v17 = vadd.f32 %v677_v10, %v676_v5  ;;  %v3150_v22 = vpop.eup %2603  ;;  %v3153_v27 = vadd.f32 1e-06, %v3139_v13 }
  0xae   : > { %v661_v20 = vadd.f32 %v660_v12, %v659_v3  ;;  %v3157_v32 = vpop.eup %2605  ;;  %v3162_v35 = vadd.f32 1e-06, %v3150_v22 }
  0xaf   : > { %v684_v23 = vadd.f32 1e-06, %v668_v14  ;;  %v675_v24 = vadd.f32 %v674_v16, %v673_v9  ;;  %v679_v25 = vrot.slane %v678_v17, 2  ;;  %v3164_v36 = vpop.eup %2607  ;;  %v3171_v42 = vadd.f32 1e-06, %v3157_v32 }
  0xb0   : > { %v683_v26 = vadd.f32 1e-06, %v661_v20  ;;  %v3176_v48 = vadd.f32 1e-06, %v3164_v36 }
  0xb1   : > { %v729_v28 = vmul.f32 %v684_v23, %v3137_v11  ;;  %v730_v29 = vmul.f32 %v684_v23, %v3142_v15  ;;  %v685_v30 = vadd.f32 1e-06, %v675_v24  ;;  %v680_v31 = vadd.f32 %v679_v25, %v678_v17 }
  0xb2   : > { %v727_v33 = vmul.f32 %v683_v26, %v3145_v18  ;;  %v728_v34 = vmul.f32 %v683_v26, %v3148_v21 }
  0xb3   : > { %v741_v37 = vsel %vm654_vm0, %v729_v28, 0.0  ;;  %v681_v39 = vrot.slane %v680_v31, 1  ;;  %v744_v40 = vsel %vm654_vm0, %v730_v29, 0.0  ;;  %v732_v41 = vmul.f32 %v685_v30, %v3153_v27 }
  0xb4   : > { %742 = vadd.xlane.f32.xlu1 %v741_v37  ;;  %v735_v38 = vsel %vm654_vm0, %v727_v33, 0.0  ;;  %v738_v43 = vsel %vm654_vm0, %v728_v34, 0.0  ;;  %v731_v45 = vmul.f32 %v685_v30, %v3162_v35 }
  0xb5   : > { %736 = vadd.xlane.f32.xlu0 %v735_v38  ;;  %v682_v47 = vadd.f32 %v681_v39, %v680_v31  ;;  %v750_v51 = vsel %vm654_vm0, %v732_v41, 0.0 }
  0xb6   : > { %v747_v52 = vsel %vm654_vm0, %v731_v45, 0.0 }
  0xb7   : > { %v686_v50 = vadd.f32 1e-06, %v682_v47 }
  0xb8   : > { %745 = vadd.xlane.f32.xlu1 %v744_v40 }
  0xb9   : > { %739 = vadd.xlane.f32.xlu0 %v738_v43  ;;  %v734_v53 = vmul.f32 %v686_v50, %v3171_v42  ;;  %v733_v54 = vmul.f32 %v686_v50, %v3176_v48 }
  0xbb   : > { %v756_v55 = vsel %vm654_vm0, %v734_v53, 0.0  ;;  %v753_v56 = vsel %vm654_vm0, %v733_v54, 0.0 }
  0xbc   : > { %751 = vadd.xlane.f32.xlu1 %v750_v51 }
  0xbd   : > { %748 = vadd.xlane.f32.xlu0 %v747_v52 }
  0xc0   : > { %757 = vadd.xlane.f32.xlu1 %v756_v55 }
  0xc1   : > { %754 = vadd.xlane.f32.xlu0 %v753_v56 }
 0x13d   : > { %v743_v58 = vpop.xlane.xlu1 %742 }
 0x13e   : > { %2609 = vrcp.f32 %v743_v58  ;;  %v737_v59 = vpop.xlane.xlu0 %736 }
 0x13f   : > { %2611 = vrcp.f32 %v737_v59 }
 0x141   : > { %v746_v61 = vpop.xlane.xlu1 %745 }
 0x142   : > { %2613 = vrcp.f32 %v746_v61  ;;  %v740_v63 = vpop.xlane.xlu0 %739 }
 0x143   : > { %2615 = vrcp.f32 %v740_v63 }
 0x145   : > { %v752_v0 = vpop.xlane.xlu1 %751 }
 0x146   : > { %2617 = vrcp.f32 %v752_v0  ;;  %v749_v3 = vpop.xlane.xlu0 %748 }
 0x147   : > { %2619 = vrcp.f32 %v749_v3 }
 0x149   : > { %v758_v5 = vpop.xlane.xlu1 %757 }
 0x14a   : > { %2621 = vrcp.f32 %v758_v5  ;;  %v755_v7 = vpop.xlane.xlu0 %754 }
 0x14b   : > { %v3184_v9 = vpop.eup %2609  ;;  %2623 = vrcp.f32 %v755_v7 }
 0x14c   : > { %v3186_v10 = vpop.eup %2611  ;;  %v837_v12 = vmul.f32 %v3184_v9, %v3124_v57 }
 0x14d   : > { %v835_v16 = vmul.f32 %v3186_v10, %v3126_v60 }
 0x14e   : > { %v852_v24 = vsel %vm654_vm0, %v837_v12, 0.0 }
 0x14f   : > { %v3190_v14 = vpop.eup %2613  ;;  %v843_v29 = vsel %vm654_vm0, %v835_v16, 0.0 }
 0x150   : > { %v3194_v17 = vpop.eup %2615  ;;  %v838_v20 = vmul.f32 %v3190_v14, %v3130_v1 }
 0x151   : > { %v836_v23 = vmul.f32 %v3194_v17, %v3134_v6 }
 0x152   : > { %v853_v25 = vsel %vm654_vm0, %v838_v20, 0.0  ;;  %v3225_v20 = vadd.f32 1e-06, %v3112_v44 }
 0x153   : > { %v3202_v26 = vpop.eup %2617  ;;  %v854_v28 = vadd.f32 %v853_v25, %v852_v24  ;;  %v844_v30 = vsel %vm654_vm0, %v836_v23, 0.0  ;;  %v3228_v24 = vadd.f32 1e-06, %v3114_v46 }
 0x154   : > { %v3206_v31 = vpop.eup %2619  ;;  %v845_v33 = vadd.f32 %v844_v30, %v843_v29  ;;  %v840_v34 = vmul.f32 %v3202_v26, %v3139_v13 }
 0x155   : > { %v855_v37 = vrot.slane %v854_v28, 4  ;;  %v839_v38 = vmul.f32 %v3206_v31, %v3150_v22 }
 0x156   : > { %v846_v39 = vrot.slane %v845_v33, 4  ;;  %v862_v40 = vsel %vm654_vm0, %v840_v34, 0.0 }
 0x157   : > { %v3213_v41 = vpop.eup %2621  ;;  %v856_v43 = vadd.f32 %v855_v37, %v854_v28  ;;  %v861_v45 = vsel %vm654_vm0, %v839_v38, 0.0 }
 0x158   : > { %v3216_v47 = vpop.eup %2623  ;;  %v847_v50 = vadd.f32 %v846_v39, %v845_v33  ;;  %v863_v51 = vadd.f32 %v862_v40, %v861_v45  ;;  %v842_v52 = vmul.f32 %v3213_v41, %v3157_v32  ;;  %v3233_v40 = vadd.f32 1e-06, %v3118_v49 }
 0x159   : > { %v857_v53 = vrot.slane %v856_v43, 2  ;;  %v841_v54 = vmul.f32 %v3216_v47, %v3164_v36 }
 0x15a   : > { %v848_v55 = vrot.slane %v847_v50, 2  ;;  %v864_v56 = vrot.slane %v863_v51, 4  ;;  %v871_v58 = vsel %vm654_vm0, %v842_v52, 0.0 }
 0x15b   : > { %v858_v59 = vadd.f32 %v857_v53, %v856_v43  ;;  %v870_v61 = vsel %vm654_vm0, %v841_v54, 0.0 }
 0x15c   : > { %v849_v63 = vadd.f32 %v848_v55, %v847_v50  ;;  %v865_v0 = vadd.f32 %v864_v56, %v863_v51  ;;  %v872_v3 = vadd.f32 %v871_v58, %v870_v61  ;;  %v3239_v55 = vadd.f32 1e-06, %v3128_v62 }
 0x15d   : > { %v859_v5 = vrot.slane %v858_v59, 1 }
 0x15e   : > { %v850_v7 = vrot.slane %v849_v63, 1  ;;  %v866_v12 = vrot.slane %v865_v0, 2  ;;  %v873_v16 = vrot.slane %v872_v3, 4 }
 0x15f   : > { %v860_v23 = vadd.f32 %v859_v5, %v858_v59 }
 0x160   : > { %v851_v25 = vadd.f32 %v850_v7, %v849_v63  ;;  %v867_v28 = vadd.f32 %v866_v12, %v865_v0  ;;  %v874_v29 = vadd.f32 %v873_v16, %v872_v3  ;;  %v992_v0 = vand.u32 127, %v286_v2 }
 0x161   : > { %v880_v30 = vadd.f32 1e-06, %v860_v23 }
 0x162   : > { %v879_v33 = vadd.f32 1e-06, %v851_v25  ;;  %v868_v34 = vrot.slane %v867_v28, 1  ;;  %v875_v37 = vrot.slane %v874_v29, 2  ;;  %v995_v5 = vsub.s32 %v992_v0, %v3072_v4 }
 0x163   : > { %v972_v38 = vmul.f32 %v880_v30, %v3225_v20 }
 0x164   : > { %v971_v39 = vmul.f32 %v879_v33, %v3228_v24  ;;  %v869_v43 = vadd.f32 %v868_v34, %v867_v28  ;;  %v876_v45 = vadd.f32 %v875_v37, %v874_v29  ;;  %v2842_v37 = vmov 0  }
 0x165   : > { %v978_v50 = vsel %vm654_vm0, %v972_v38, 0.0  ;;  %2544 = vset.pattern.permute.xlu0 %v2842_v37  ;;  %2543 = vset.pattern.permute.xlu1 %v2842_v37  ;;  %v1023_v38 = vsub.s32 0, %v3072_v4 }
 0x166   : > { %979 = vadd.xlane.f32.xlu1 %v978_v50  ;;  %v975_v51 = vsel %vm654_vm0, %v971_v39, 0.0  ;;  %v881_v52 = vadd.f32 1e-06, %v869_v43  ;;  %v877_v53 = vrot.slane %v876_v45, 1  ;;  %v1027_v39 = vsub.s32 1, %v3072_v4 }
 0x167   : > { %976 = vadd.xlane.f32.xlu0 %v975_v51  ;;  %v1031_v43 = vsub.s32 2, %v3072_v4 }
 0x168   : > { %v973_v54 = vmul.f32 %v881_v52, %v3233_v40  ;;  %v878_v56 = vadd.f32 %v877_v53, %v876_v45  ;;  %v1035_v45 = vsub.s32 3, %v3072_v4 }
 0x16a   : > { %v981_v58 = vsel %vm654_vm0, %v973_v54, 0.0  ;;  %v882_v59 = vadd.f32 1e-06, %v878_v56 }
 0x16b   : > { %982 = vadd.xlane.f32.xlu0 %v981_v58 }
 0x16c   : > { %v974_v61 = vmul.f32 %v882_v59, %v3239_v55 }
 0x16e   : > { %v984_v63 = vsel %vm654_vm0, %v974_v61, 0.0 }
 0x16f   : > { %985 = vadd.xlane.f32.xlu1 %v984_v63 }
 0x1ef   : > { %v980_v7 = vpop.xlane.xlu1 %979 }
 0x1f0   : > { %v977_v3 = vpop.xlane.xlu0 %976  ;;  %v1000_v16 = vrot.slane %v980_v7, %v995_v5 }
 0x1f1   : > { %v996_v23 = vrot.slane %v977_v3, %v995_v5 }
 0x1f3   : > { %v1010_v30 = vsel %vm1009_vm1, %v1000_v16, %v996_v23 }
 0x1f4   : > { %v983_v12 = vpop.xlane.xlu0 %982 }
 0x1f5   : > { %v1004_v25 = vrot.slane %v983_v12, %v995_v5 }
 0x1f7   : > { %v1012_v33 = vsel %vm1011_vm2, %v1004_v25, %v1010_v30 }
 0x1f8   : > { %v986_v28 = vpop.xlane.xlu1 %985 }
 0x1f9   : > { %v1008_v29 = vrot.slane %v986_v28, %v995_v5 }
 0x1fb   : > { %v1014_v2 = vsel %vm1013_vm3, %v1008_v29, %v1012_v33 }
 0x1fc   : > { %v1017_v34 = vsel %vm1016_vm4, %v1014_v2, -inf }
 0x1fd   : > { %1018 = vmax.xlane.f32.xlu0 %v1017_v34 }
 0x286   : > { %v1019_v50 = vpop.xlane.xlu0 %1018 }
 0x287   : > { %v1024_v51 = vrot.slane %v1019_v50, %v1023_v38  ;;  %v1028_v52 = vrot.slane %v1019_v50, %v1027_v39  ;;  %v1032_v53 = vrot.slane %v1019_v50, %v1031_v43  ;;  %v1036_v54 = vrot.slane %v1019_v50, %v1035_v45 }
 0x289   : > { %v1041_v56 = vsub.f32 %v977_v3, %v1024_v51  ;;  %v1042_v58 = vsub.f32 %v980_v7, %v1028_v52  ;;  %v1043_v59 = vsub.f32 %v983_v12, %v1032_v53  ;;  %v1044_v0 = vsub.f32 %v986_v28, %v1036_v54 }
 0x28b   : > { %v1045_v61 = vmul.f32 1.442695, %v1041_v56  ;;  %v1047_v63 = vmul.f32 1.442695, %v1042_v58  ;;  %v1049_v16 = vmul.f32 1.442695, %v1043_v59 }
 0x28c   : > { %v1051_v23 = vmul.f32 1.442695, %v1044_v0  ;;  %v687_v56 = vsel %vm654_vm0, %v3126_v60, 0.0  ;;  %v688_v58 = vsel %vm654_vm0, %v3134_v6, 0.0 }
 0x28d   : > { %2625 = vpow2.f32 %v1045_v61  ;;  %v689_v59 = vadd.f32 %v688_v58, %v687_v56 }
 0x28e   : > { %2627 = vpow2.f32 %v1047_v63 }
 0x28f   : > { %2629 = vpow2.f32 %v1049_v16  ;;  %v690_v61 = vrot.slane %v689_v59, 4 }
 0x290   : > { %2631 = vpow2.f32 %v1051_v23 }
 0x291   : > { %v691_v63 = vadd.f32 %v690_v61, %v689_v59 }
 0x293   : > { %v692_v0 = vrot.slane %v691_v63, 2 }
 0x29a   : > { %v3262_v25 = vpop.eup %2625 }
 0x29b   : > { %v3264_v29 = vpop.eup %2627  ;;  %1058 = vperm.xlu1 %2543, %v3262_v25  }
 0x29c   : > { %1061 = vperm.xlu0 %2544, %v3264_v29   ;;  %v3268_v3 = vpop.eup %2629 }
 0x29d   : > { %v3271_v7 = vpop.eup %2631 }
 0x29f   : > { %1064 = vperm.xlu1 %2543, %v3268_v3  }
 0x2a3   : > { %1067 = vperm.xlu1 %2543, %v3271_v7  }
 0x2ba   : > { %1279 = vxpose.xlu0.b32.start.end [1/1] (short) (narrow) %v3112_v44, 32 }
 0x316   : > { %v1059_v12 = vpop.permute.xlu1 %1058 }
 0x317   : > { %v1062_v28 = vpop.permute.xlu0 %1061  ;;  %v1072_v2 = vrot.slane %v1059_v12, %v995_v5 }
 0x318   : > { %v1076_v33 = vrot.slane %v1062_v28, %v995_v5 }
 0x31a   : > { %v1065_v30 = vpop.permute.xlu1 %1064  ;;  %v1085_v50 = vsel %vm1009_vm1, %v1076_v33, %v1072_v2  ;;  %v705_v33 = vsel %vm654_vm0, %v3150_v22, 0.0  ;;  %v706_v2 = vsel %vm654_vm0, %v3139_v13, 0.0 }
 0x31b   : > { %v1080_v34 = vrot.slane %v1065_v30, %v995_v5 }
 0x31d   : > { %v1086_v52 = vsel %vm1011_vm2, %v1080_v34, %v1085_v50  ;;  %v714_v34 = vsel %vm654_vm0, %v3164_v36, 0.0  ;;  %v707_v50 = vadd.f32 %v706_v2, %v705_v33 }
 0x31e   : > { %v1068_v37 = vpop.permute.xlu1 %1067 }
 0x31f   : > { %v1084_v51 = vrot.slane %v1068_v37, %v995_v5  ;;  %v693_v5 = vadd.f32 %v692_v0, %v691_v63  ;;  %v715_v37 = vsel %vm654_vm0, %v3157_v32, 0.0 }
 0x321   : > { %v1087_v53 = vsel %vm1013_vm3, %v1084_v51, %v1086_v52  ;;  %v694_v16 = vrot.slane %v693_v5, 1  ;;  %v716_v51 = vadd.f32 %v715_v37, %v714_v34  ;;  %v708_v52 = vrot.slane %v707_v50, 4 }
 0x322   : > { %v1089_v54 = vsel %vm1016_vm4, %v1087_v53, 0.0 }
 0x323   : > { %1090 = vadd.xlane.f32.xlu1 %v1089_v54  ;;  %v695_v23 = vadd.f32 %v694_v16, %v693_v5  ;;  %v717_v53 = vrot.slane %v716_v51, 4 }
 0x325   : > { %v723_v12 = vadd.f32 1e-06, %v695_v23  ;;  %v718_v54 = vadd.f32 %v717_v53, %v716_v51 }
 0x327   : > { %v775_v28 = vmul.f32 %v723_v12, %v3228_v24  ;;  %v709_v24 = vadd.f32 %v708_v52, %v707_v50  ;;  %v719_v58 = vrot.slane %v718_v54, 2 }
 0x329   : > { %v779_v30 = vsel %vm654_vm0, %v775_v28, 0.0  ;;  %v710_v56 = vrot.slane %v709_v24, 2  ;;  %v720_v61 = vadd.f32 %v719_v58, %v718_v54 }
 0x32b   : > { %v711_v59 = vadd.f32 %v710_v56, %v709_v24  ;;  %v721_v0 = vrot.slane %v720_v61, 1 }
 0x32d   : > { %v712_v63 = vrot.slane %v711_v59, 1  ;;  %v722_v16 = vadd.f32 %v721_v0, %v720_v61 }
 0x32f   : > { %v713_v5 = vadd.f32 %v712_v63, %v711_v59  ;;  %v726_v12 = vadd.f32 1e-06, %v722_v16  ;;  %v697_v63 = vsel %vm654_vm0, %v3130_v1, 0.0 }
 0x331   : > { %v725_v23 = vadd.f32 1e-06, %v713_v5 }
 0x333   : > { %v777_v28 = vmul.f32 %v725_v23, %v3233_v40 }
 0x335   : > { %v785_v33 = vsel %vm654_vm0, %v777_v28, 0.0 }
 0x356   : > { %1149 = vxpose.xlu1.b32.start.end [1/1] (short) (narrow) %v3114_v46, 32 }
 0x389   : > { %780 = vadd.xlane.f32.xlu1 %v779_v30  ;;  %v778_v30 = vmul.f32 %v726_v12, %v3239_v55 }
 0x38b   : > { %v788_v2 = vsel %vm654_vm0, %v778_v30, 0.0 }
 0x38d   : > { %786 = vadd.xlane.f32.xlu1 %v785_v33 }
 0x391   : > { %789 = vadd.xlane.f32.xlu1 %v788_v2 }
 0x3ac   : > { %v1091_v34 = vpop.xlane.xlu1 %1090 }
 0x3ad   : > { %v1096_v37 = vrot.slane %v1091_v34, %v1023_v38  ;;  %v1100_v50 = vrot.slane %v1091_v34, %v1027_v39  ;;  %v1104_v51 = vrot.slane %v1091_v34, %v1031_v43  ;;  %v1108_v40 = vrot.slane %v1091_v34, %v1035_v45  ;;  %v1295_v43 = vpop.trf.xlu0 }
 0x3ae   : > { %2413 = vmatprep.mubr.msk.f32.mxu1 %vm1181_vm5, %v1295_v43 }
 0x3af   : > { %2633 = vrcp.f32 %v1096_v37 }
 0x3b0   : > { %2635 = vrcp.f32 %v1100_v50 }
 0x3b1   : > { %2637 = vrcp.f32 %v1104_v51 }
 0x3b2   : > { %2639 = vrcp.f32 %v1108_v40 }
 0x3bc   : > { %v2634_v55 = vpop.eup %2633 }
 0x3bd   : > { %v2636_v52 = vpop.eup %2635  ;;  %v1114_v38 = vmul.f32 %v2634_v55, %v3262_v25 }
 0x3be   : > { %v1116_v39 = vmul.f32 %v2636_v52, %v3264_v29  ;;  %v2638_v24 = vpop.eup %2637  ;;  %v2557_v52 = vld [vmem:[%s3308_s22] ss:$8 sps:$4 sm:$0xff]  }
 0x3bf   : > { %v1121_v53 = vmul.f32 8.0, %v1114_v38  ;;  %v1118_v45 = vmul.f32 %v2638_v24, %v3268_v3  ;;  %v2640_v54 = vpop.eup %2639  ;;  %v696_v3 = vsel %vm654_vm0, %v3124_v57, 0.0  ;;  %v2558_v38 = vld [vmem:[%s3308_s22 + $0x4] ss:$8 sps:$4 sm:$0xff]   ;;  %v1296_v24 = vpop.trf.xlu0 }
 0x3c0   : > { %v1122_v4 = vmul.f32 8.0, %v1116_v39  ;;  %v1120_v58 = vmul.f32 %v2640_v54, %v3271_v7  ;;  %v698_v0 = vadd.f32 %v697_v63, %v696_v3  ;;  %v2560_v39 = vld [vmem:[%s3308_s22 + $0x14] ss:$8 sps:$4 sm:$0xff]   ;;  %v509_v54 = vrot.slane %v2557_v52, %v3076_v8 }
 0x3c1   : > { %1127 = vperm.xlu0 %2544, %v1121_v53   ;;  %v1123_v56 = vmul.f32 8.0, %v1118_v45  ;;  %v2559_v53 = vld [vmem:[%s3308_s22 + $0x10] ss:$8 sps:$4 sm:$0xff]  }
 0x3c2   : > { %v1124_v59 = vmul.f32 8.0, %v1120_v58  ;;  %v699_v5 = vrot.slane %v698_v0, 4  ;;  %v533_v58 = vrot.slane %v2560_v39, %v3076_v8 }
 0x3c3   : > { %v1297_v3 = vpop.trf.xlu0 }
 0x3c4   : > { %v700_v23 = vadd.f32 %v699_v5, %v698_v0 }
 0x3c5   : > { %1132 = vperm.xlu0 %2544, %v1122_v4  }
 0x3c6   : > { %v701_v12 = vrot.slane %v700_v23, 2 }
 0x3c8   : > { %v702_v28 = vadd.f32 %v701_v12, %v700_v23 }
 0x3c9   : > { %1137 = vperm.xlu0 %2544, %v1123_v56   ;;  %v525_v56 = vrot.slane %v2559_v53, %v3076_v8 }
 0x3ca   : > { %v703_v30 = vrot.slane %v702_v28, 1 }
 0x3cb   : > { %v550_v5 = vcombine.low %v525_v56, %v533_v58 }
 0x3cc   : > { %v704_v34 = vadd.f32 %v703_v30, %v702_v28  ;;  %v1298_v30 = vpop.trf.xlu0 }
 0x3cd   : > { %1142 = vperm.xlu0 %2544, %v1124_v59   ;;  %v558_v28 = vrot.slane %v550_v5, %v3086_v19 }
 0x3ce   : > { %v724_v51 = vadd.f32 1e-06, %v704_v34 }
 0x3d0   : > { %v776_v43 = vmul.f32 %v724_v51, %v3225_v20 }
 0x3d2   : > { %v1165_v25 = vpop.trf.xlu1  ;;  %v782_v59 = vsel %vm654_vm0, %v776_v43, 0.0 }
 0x3d3   : > { %2405 = vmatprep.mubr.msk.f32.mxu0 %vm1181_vm5, %v1165_v25 }
 0x3d6   : > { %v1166_v29 = vpop.trf.xlu1 }
 0x3da   : > { %v1167_v61 = vpop.trf.xlu1 }
 0x3de   : > { %v3322_v7 = vpop.trf.xlu1 }
 0x3eb   : > { %1408 = vxpose.xlu0.b32.start.end [1/1] (short) (narrow) %v3118_v49, 32 }
 0x3f8   : > { %1537 = vxpose.xlu0.b32.start.end [1/1] (short) (narrow) %v3128_v62, 32 }
 0x412   : > { %v781_v16 = vpop.xlane.xlu1 %780 }
 0x413   : > { %2641 = vrcp.f32 %v781_v16 }
 0x420   : > { %v2642_v33 = vpop.eup %2641 }
 0x421   : > { %v799_v2 = vmul.f32 %v2642_v33, %v3114_v46  ;;  %v517_v46 = vrot.slane %v2558_v38, %v3076_v8 }
 0x423   : > { %v803_v37 = vsel %vm654_vm0, %v799_v2, 0.0  ;;  %v534_v0 = vcombine.low %v509_v54, %v517_v46  ;;  %v535_v34 = vcombine.high %v509_v54, %v517_v46 }
 0x424   : > { %v804_v50 = vrot.slane %v803_v37, 4 }
 0x425   : > { %v542_v12 = vrot.slane %v534_v0, %v3086_v19 }
 0x426   : > { %v805_v40 = vadd.f32 %v804_v50, %v803_v37  ;;  %v551_v37 = vcombine.high %v525_v56, %v533_v58 }
 0x427   : > { %v566_v2 = vcombine.low %v542_v12, %v558_v28 }
 0x428   : > { %v806_v55 = vrot.slane %v805_v40, 2 }
 0x42a   : > { %v807_v4 = vadd.f32 %v806_v55, %v805_v40  ;;  %v567_v40 = vcombine.high %v542_v12, %v558_v28 }
 0x42c   : > { %v808_v45 = vrot.slane %v807_v4, 1 }
 0x42e   : > { %v809_v25 = vadd.f32 %v808_v45, %v807_v4 }
 0x430   : > { %v831_v63 = vadd.f32 1e-06, %v809_v25 }
 0x431   : > { %783 = vadd.xlane.f32.xlu0 %v782_v59  ;;  %v787_v59 = vpop.xlane.xlu1 %786 }
 0x432   : > { %v883_v20 = vmul.f32 %v831_v63, %v3145_v18  ;;  %v884_v16 = vmul.f32 %v831_v63, %v3148_v21  ;;  %v549_v18 = vrot.slane %v535_v34, %v3086_v19  ;;  %v565_v21 = vrot.slane %v551_v37, %v3086_v19 }
 0x433   : > { %2643 = vrcp.f32 %v787_v59 }
 0x434   : > { %v891_v23 = vsel %vm654_vm0, %v883_v20, 0.0  ;;  %v894_v33 = vsel %vm654_vm0, %v884_v16, 0.0  ;;  %v568_v38 = vcombine.low %v549_v18, %v565_v21  ;;  %v569_v43 = vcombine.high %v549_v18, %v565_v21 }
 0x435   : > { %892 = vadd.xlane.f32.xlu1 %v891_v23  ;;  %v790_v25 = vpop.xlane.xlu1 %789 }
 0x436   : > { %2645 = vrcp.f32 %v790_v25 }
 0x439   : > { %895 = vadd.xlane.f32.xlu1 %v894_v33 }
 0x43c   : > { %v1128_v50 = vpop.permute.xlu0 %1127 }
 0x43d   : > { %v1145_v51 = vmul.f32 %v1128_v50, %v566_v2 }
 0x43f   : > { %2403 = vmatprep.subr.mxu0 %v1145_v51 }
 0x440   : > { %2404 = vmatpush3.msra.mxu0 %v1145_v51  ;;  %v1133_v55 = vpop.permute.xlu0 %1132 }
 0x441   : > { %v1146_v52 = vmul.f32 %v1133_v55, %v567_v40  ;;  %2406 = vmatmul.mubr.msk.f32.vlgmr.msra.gmra.mxu0 %vm1181_vm5, %v1166_v29 }
 0x442   : > { %2408 = vmatprep.mubr.msk.f32.mxu0 %vm1181_vm5, %v1167_v61 }
 0x443   : > { %2411 = vmatprep.subr.mxu1 %v1146_v52 }
 0x444   : > { %2412 = vmatpush3.msra.mxu1 %v1146_v52  ;;  %v1138_v53 = vpop.permute.xlu0 %1137 }
 0x445   : > { %v1147_v39 = vmul.f32 %v1138_v53, %v568_v38  ;;  %2409 = vmatmul.mubr.msk.f32.gmra.mxu0 %vm1181_vm5, %v3322_v7  ;;  %2414 = vmatmul.mubr.msk.f32.vlgmr.msra.gmra.mxu1 %vm1181_vm5, %v1296_v24 }
 0x446   : > { %2416 = vmatprep.mubr.msk.f32.mxu1 %vm1181_vm5, %v1297_v3 }
 0x447   : > { %2419 = vmatprep.subr.mxu0 %v1147_v39 }
 0x448   : > { %v1143_v4 = vpop.permute.xlu0 %1142  ;;  %2420 = vmatpush3.msra.mxu0 %v1147_v39 }
 0x449   : > { %v1148_v45 = vmul.f32 %v1143_v4, %v569_v43  ;;  %2417 = vmatmul.mubr.msk.f32.gmra.mxu1 %vm1181_vm5, %v1298_v30 }
 0x44b   : > { %2427 = vmatprep.subr.mxu1 %v1148_v45 }
 0x44c   : > { %2428 = vmatpush3.msra.mxu1 %v1148_v45 }
 0x467   : > { %v1424_v29 = vpop.trf.xlu0 }
 0x468   : > { %2421 = vmatprep.mubr.msk.f32.mxu0 %vm1181_vm5, %v1424_v29 }
 0x46b   : > { %v1425_v61 = vpop.trf.xlu0 }
 0x46c   : > { %2422 = vmatmul.mubr.msk.f32.vlgmr.msra.gmra.mxu0 %vm1181_vm5, %v1425_v61 }
 0x46f   : > { %v1426_v7 = vpop.trf.xlu0 }
 0x470   : > { %2424 = vmatprep.mubr.msk.f32.mxu0 %vm1181_vm5, %v1426_v7 }
 0x473   : > { %v1427_v24 = vpop.trf.xlu0 }
 0x474   : > { %2425 = vmatmul.mubr.msk.f32.gmra.mxu0 %vm1181_vm5, %v1427_v24 }
 0x475   : > { %2443 = vmatprep.mubr.msk.f32.mxu0 %vm654_vm0, %v3126_v60  ;;  %v2644_v60 = vpop.eup %2643 }
 0x476   : > { %v801_v3 = vmul.f32 %v2644_v60, %v3118_v49  ;;  %v2646_v63 = vpop.eup %2645 }
 0x477   : > { %v1553_v54 = vpop.trf.xlu0  ;;  %v802_v20 = vmul.f32 %v2646_v63, %v3128_v62 }
 0x478   : > { %2429 = vmatprep.mubr.msk.f32.mxu1 %vm1181_vm5, %v1553_v54  ;;  %v817_v5 = vsel %vm654_vm0, %v801_v3, 0.0 }
 0x479   : > { %v818_v16 = vrot.slane %v817_v5, 4  ;;  %v824_v23 = vsel %vm654_vm0, %v802_v20, 0.0 }
 0x47a   : > { %v825_v28 = vrot.slane %v824_v23, 4 }
 0x47b   : > { %v1554_v46 = vpop.trf.xlu0  ;;  %v819_v12 = vadd.f32 %v818_v16, %v817_v5 }
 0x47c   : > { %2430 = vmatmul.mubr.msk.f32.vlgmr.msra.gmra.mxu1 %vm1181_vm5, %v1554_v46  ;;  %v826_v30 = vadd.f32 %v825_v28, %v824_v23 }
 0x47e   : > { %v827_v37 = vrot.slane %v826_v30, 2 }
 0x47f   : > { %v1555_v56 = vpop.trf.xlu0 }
 0x480   : > { %2432 = vmatprep.mubr.msk.f32.mxu1 %vm1181_vm5, %v1555_v56  ;;  %v828_v18 = vadd.f32 %v827_v37, %v826_v30 }
 0x482   : > { %v829_v52 = vrot.slane %v828_v18, 1 }
 0x483   : > { %v1556_v58 = vpop.trf.xlu0 }
 0x484   : > { %2433 = vmatmul.mubr.msk.f32.gmra.mxu1 %vm1181_vm5, %v1556_v58  ;;  %v830_v43 = vadd.f32 %v829_v52, %v828_v18 }
 0x485   : > { %2454 = vmatprep.mubr.msk.f32.mxu1 %vm654_vm0, %v3124_v57  ;;  %v820_v57 = vrot.slane %v819_v12, 2 }
 0x486   : > { %v834_v7 = vadd.f32 1e-06, %v830_v43 }
 0x487   : > { %v821_v34 = vadd.f32 %v820_v57, %v819_v12 }
 0x488   : > { %v890_v58 = vmul.f32 %v834_v7, %v3171_v42 }
 0x489   : > { %v822_v51 = vrot.slane %v821_v34, 1 }
 0x48b   : > { %v823_v62 = vadd.f32 %v822_v51, %v821_v34 }
 0x48d   : > { %v833_v53 = vadd.f32 1e-06, %v823_v62 }
 0x48f   : > { %v888_v45 = vmul.f32 %v833_v53, %v3153_v27  ;;  %v887_v61 = vmul.f32 %v833_v53, %v3162_v35  ;;  %v889_v27 = vmul.f32 %v834_v7, %v3176_v48 }
 0x491   : > { %v906_v46 = vsel %vm654_vm0, %v888_v45, 0.0  ;;  %v903_v56 = vsel %vm654_vm0, %v887_v61, 0.0 }
 0x4ba   : > { %v784_v0 = vpop.xlane.xlu0 %783 }
 0x4bb   : > { %2647 = vrcp.f32 %v784_v0 }
 0x4be   : > { %v893_v23 = vpop.xlane.xlu1 %892 }
 0x4c2   : > { %v896_v12 = vpop.xlane.xlu1 %895 }
 0x4c3   : > { %v2319_v34 = vmul.f32 -2.0, %v896_v12 }
 0x4c5   : > { %v933_v62 = vmul.f32 1.442695, %v2319_v34 }
 0x4c8   : > { %v2648_v33 = vpop.eup %2647 }
 0x4c9   : > { %v800_v2 = vmul.f32 %v2648_v33, %v3112_v44 }
 0x4cb   : > { %v810_v49 = vsel %vm654_vm0, %v800_v2, 0.0  ;;  %v2318_v2 = vmul.f32 -2.0, %v893_v23 }
 0x4cc   : > { %v811_v50 = vrot.slane %v810_v49, 4 }
 0x4cd   : > { %v931_v18 = vmul.f32 1.442695, %v2318_v2 }
 0x4ce   : > { %v812_v40 = vadd.f32 %v811_v50, %v810_v49 }
 0x4d0   : > { %v813_v21 = vrot.slane %v812_v40, 2 }
 0x4d2   : > { %v814_v55 = vadd.f32 %v813_v21, %v812_v40 }
 0x4d4   : > { %v815_v38 = vrot.slane %v814_v55, 1 }
 0x4d6   : > { %v816_v39 = vadd.f32 %v815_v38, %v814_v55 }
 0x4d8   : > { %v832_v4 = vadd.f32 1e-06, %v816_v39 }
 0x4da   : > { %v885_v44 = vmul.f32 %v832_v4, %v3137_v11  ;;  %v886_v29 = vmul.f32 %v832_v4, %v3142_v15  ;;  %v912_v11 = vsel %vm654_vm0, %v890_v58, 0.0  ;;  %v909_v15 = vsel %vm654_vm0, %v889_v27, 0.0 }
 0x4dc   : > { %v897_v24 = vsel %vm654_vm0, %v885_v44, 0.0  ;;  %v900_v54 = vsel %vm654_vm0, %v886_v29, 0.0 }
 0x4dd   : > { %898 = vadd.xlane.f32.xlu0 %v897_v24  ;;  %901 = vadd.xlane.f32.xlu1 %v900_v54 }
 0x4e1   : > { %907 = vadd.xlane.f32.xlu1 %v906_v46  ;;  %904 = vadd.xlane.f32.xlu0 %v903_v56 }
 0x4e5   : > { %913 = vadd.xlane.f32.xlu1 %v912_v11  ;;  %910 = vadd.xlane.f32.xlu0 %v909_v15 }
 0x501   : > { %v2407_v35 = vpop.f32.mrf.mxu0 }
 0x503   : > { %v1260_v59 = vpop.f32.mrf.mxu0 }
 0x505   : > { %v2410_v25 = vpop.f32.mrf.mxu0  ;;  %v2415_v60 = vpop.f32.mrf.mxu1 }
 0x506   : > { %2435 = vmatprep.subr.mxu0 %v2410_v25 }
 0x507   : > { %v1270_v3 = vpop.f32.mrf.mxu0  ;;  %v1389_v63 = vpop.f32.mrf.mxu1  ;;  %2436 = vmatpush3.msra.mxu0 %v2410_v25 }
 0x508   : > { %2437 = vmatprep.subr.mxu0 %v1270_v3 }
 0x509   : > { %v2418_v42 = vpop.f32.mrf.mxu1  ;;  %2438 = vmatpush3.msra.mxu0 %v1270_v3 }
 0x50a   : > { %2439 = vmatprep.subr.mxu0 %v2407_v35  ;;  %2446 = vmatprep.subr.mxu1 %v2418_v42 }
 0x50b   : > { %v1399_v48 = vpop.f32.mrf.mxu1  ;;  %2440 = vmatpush3.msra.mxu0 %v2407_v35  ;;  %2447 = vmatpush3.msra.mxu1 %v2418_v42 }
 0x50c   : > { %2441 = vmatprep.subr.mxu0 %v1260_v59  ;;  %2448 = vmatprep.subr.mxu1 %v1399_v48 }
 0x50d   : > { %2442 = vmatpush3.msra.mxu0 %v1260_v59  ;;  %2449 = vmatpush3.msra.mxu1 %v1399_v48 }
 0x50e   : > { %2444 = vmatmul.mubr.msk.f32.vlgmr.msra.gmra.mxu0 %vm654_vm0, %v3134_v6  ;;  %2450 = vmatprep.subr.mxu1 %v2415_v60 }
 0x50f   : > { %2451 = vmatpush3.msra.mxu1 %v2415_v60  ;;  %2465 = vmatprep.mubr.msk.f32.mxu0 %vm654_vm0, %v3150_v22 }
 0x510   : > { %2452 = vmatprep.subr.mxu1 %v1389_v63 }
 0x511   : > { %2453 = vmatpush3.msra.mxu1 %v1389_v63 }
 0x512   : > { %2455 = vmatmul.mubr.msk.f32.vlgmr.msra.gmra.mxu1 %vm654_vm0, %v3130_v1 }
 0x513   : > { %2476 = vmatprep.mubr.msk.f32.mxu1 %vm654_vm0, %v3164_v36 }
 0x52c   : > { %v2423_v0 = vpop.f32.mrf.mxu0 }
 0x52e   : > { %v1518_v5 = vpop.f32.mrf.mxu0 }
 0x534   : > { %v2426_v20 = vpop.f32.mrf.mxu0 }
 0x535   : > { %2457 = vmatprep.subr.mxu0 %v2426_v20 }
 0x536   : > { %v1528_v16 = vpop.f32.mrf.mxu0  ;;  %2458 = vmatpush3.msra.mxu0 %v2426_v20 }
 0x537   : > { %2459 = vmatprep.subr.mxu0 %v1528_v16 }
 0x538   : > { %2460 = vmatpush3.msra.mxu0 %v1528_v16 }
 0x539   : > { %2461 = vmatprep.subr.mxu0 %v2423_v0 }
 0x53a   : > { %2462 = vmatpush3.msra.mxu0 %v2423_v0 }
 0x53b   : > { %2463 = vmatprep.subr.mxu0 %v1518_v5 }
 0x53c   : > { %2464 = vmatpush3.msra.mxu0 %v1518_v5  ;;  %v2431_v6 = vpop.f32.mrf.mxu1 }
 0x53d   : > { %2466 = vmatmul.mubr.msk.f32.vlgmr.msra.gmra.mxu0 %vm654_vm0, %v3139_v13 }
 0x53e   : > { %v1647_v1 = vpop.f32.mrf.mxu1 }
 0x544   : > { %v2434_v22 = vpop.f32.mrf.mxu1 }
 0x545   : > { %2468 = vmatprep.subr.mxu1 %v2434_v22 }
 0x546   : > { %v1657_v36 = vpop.f32.mrf.mxu1  ;;  %2469 = vmatpush3.msra.mxu1 %v2434_v22 }
 0x547   : > { %2470 = vmatprep.subr.mxu1 %v1657_v36 }
 0x548   : > { %2471 = vmatpush3.msra.mxu1 %v1657_v36 }
 0x549   : > { %2472 = vmatprep.subr.mxu1 %v2431_v6 }
 0x54a   : > { %2473 = vmatpush3.msra.mxu1 %v2431_v6 }
 0x54b   : > { %2474 = vmatprep.subr.mxu1 %v1647_v1 }
 0x54c   : > { %2475 = vmatpush3.msra.mxu1 %v1647_v1 }
 0x54d   : > { %2477 = vmatmul.mubr.msk.f32.vlgmr.msra.gmra.mxu1 %vm654_vm0, %v3157_v32 }
 0x566   : > { %v902_v28 = vpop.xlane.xlu1 %901  ;;  %v899_v57 = vpop.xlane.xlu0 %898 }
 0x567   : > { %v2321_v49 = vmul.f32 -2.0, %v902_v28  ;;  %v2320_v55 = vmul.f32 -2.0, %v899_v57 }
 0x569   : > { %v937_v52 = vmul.f32 1.442695, %v2321_v49  ;;  %v935_v39 = vmul.f32 1.442695, %v2320_v55 }
 0x56a   : > { %v908_v13 = vpop.xlane.xlu1 %907  ;;  %v905_v30 = vpop.xlane.xlu0 %904 }
 0x56b   : > { %v2323_v33 = vmul.f32 -2.0, %v908_v13  ;;  %v2322_v50 = vmul.f32 -2.0, %v905_v30 }
 0x56d   : > { %v941_v51 = vmul.f32 1.442695, %v2323_v33  ;;  %v939_v38 = vmul.f32 1.442695, %v2322_v50 }
 0x56e   : > { %v914_v37 = vpop.xlane.xlu1 %913  ;;  %v911_v40 = vpop.xlane.xlu0 %910 }
 0x56f   : > { %v2325_v21 = vmul.f32 -2.0, %v914_v37  ;;  %v2324_v32 = vmul.f32 -2.0, %v911_v40  ;;  %2649 = vpow2.f32 %v941_v51 }
 0x570   : > { %2651 = vpow2.f32 %v931_v18 }
 0x571   : > { %v945_v53 = vmul.f32 1.442695, %v2325_v21  ;;  %2653 = vpow2.f32 %v933_v62  ;;  %v943_v43 = vmul.f32 1.442695, %v2324_v32 }
 0x572   : > { %2655 = vpow2.f32 %v937_v52 }
 0x573   : > { %2657 = vpow2.f32 %v939_v38 }
 0x574   : > { %2659 = vpow2.f32 %v945_v53 }
 0x575   : > { %2661 = vpow2.f32 %v935_v39 }
 0x576   : > { %2663 = vpow2.f32 %v943_v43 }
 0x57c   : > { %v2650_v4 = vpop.eup %2649 }
 0x57d   : > { %v2652_v45 = vpop.eup %2651  ;;  %v952_v61 = vadd.f32 1.0, %v2650_v4 }
 0x57e   : > { %v2654_v44 = vpop.eup %2653  ;;  %v947_v24 = vadd.f32 1.0, %v2652_v45 }
 0x57f   : > { %v2656_v29 = vpop.eup %2655  ;;  %v948_v46 = vadd.f32 1.0, %v2654_v44  ;;  %2665 = vrcp.f32 %v952_v61 }
 0x580   : > { %v2658_v7 = vpop.eup %2657  ;;  %v950_v58 = vadd.f32 1.0, %v2656_v29  ;;  %2667 = vrcp.f32 %v947_v24 }
 0x581   : > { %v2660_v54 = vpop.eup %2659  ;;  %v951_v11 = vadd.f32 1.0, %v2658_v7  ;;  %2669 = vrcp.f32 %v948_v46 }
 0x582   : > { %v2662_v56 = vpop.eup %2661  ;;  %v954_v15 = vadd.f32 1.0, %v2660_v54  ;;  %2671 = vrcp.f32 %v950_v58 }
 0x583   : > { %v2664_v27 = vpop.eup %2663  ;;  %v949_v35 = vadd.f32 1.0, %v2662_v56  ;;  %2673 = vrcp.f32 %v951_v11 }
 0x584   : > { %v953_v59 = vadd.f32 1.0, %v2664_v27  ;;  %2675 = vrcp.f32 %v954_v15 }
 0x585   : > { %2677 = vrcp.f32 %v949_v35 }
 0x586   : > { %2679 = vrcp.f32 %v953_v59 }
 0x58c   : > { %v2666_v60 = vpop.eup %2665 }
 0x58d   : > { %v2668_v63 = vpop.eup %2667  ;;  %v1995_v20 = vmul.f32 %v2666_v60, %v3202_v26 }
 0x58e   : > { %v2670_v42 = vpop.eup %2669  ;;  %v1990_v2 = vmul.f32 %v2668_v63, %v3186_v10 }
 0x58f   : > { %v2672_v0 = vpop.eup %2671  ;;  %v1991_v1 = vmul.f32 %v2670_v42, %v3194_v17 }
 0x590   : > { %v2674_v16 = vpop.eup %2673  ;;  %v1993_v30 = vmul.f32 %v2672_v0, %v3190_v14 }
 0x591   : > { %v2676_v6 = vpop.eup %2675  ;;  %v1994_v13 = vmul.f32 %v2674_v16, %v3206_v31 }
 0x592   : > { %v2678_v36 = vpop.eup %2677  ;;  %v1997_v33 = vmul.f32 %v2676_v6, %v3213_v41 }
 0x593   : > { %v2680_v12 = vpop.eup %2679  ;;  %v1992_v17 = vmul.f32 %v2678_v36, %v3184_v9 }
 0x594   : > { %v1996_v40 = vmul.f32 %v2680_v12, %v3216_v47 }
 0x5ce   : > { %v2445_v25 = vpop.f32.mrf.mxu0 }
 0x5cf   : > { %v1999_v28 = vmul.f32 %v2445_v25, %v1991_v1 }
 0x5d0   : > { %v1738_v3 = vpop.f32.mrf.mxu0 }
 0x5d1   : > { %v1998_v18 = vmul.f32 %v1990_v2, %v1738_v3 }
 0x5d2   : > { %v2456_v5 = vpop.f32.mrf.mxu1 }
 0x5d3   : > { %v2001_v50 = vmul.f32 %v2456_v5, %v1993_v30 }
 0x5d4   : > { %v1819_v57 = vpop.f32.mrf.mxu1 }
 0x5d5   : > { %v2000_v62 = vmul.f32 %v1992_v17, %v1819_v57 }
 0x5fd   : > { %v2467_v48 = vpop.f32.mrf.mxu0 }
 0x5fe   : > { %v2003_v22 = vmul.f32 %v2467_v48, %v1995_v20 }
 0x5ff   : > { %v1900_v23 = vpop.f32.mrf.mxu0 }
 0x600   : > { %v2074_v34 = vcombine.low %v1999_v28, %v2003_v22  ;;  %v2075_v26 = vcombine.high %v1999_v28, %v2003_v22  ;;  %v2002_v37 = vmul.f32 %v1994_v13, %v1900_v23 }
 0x602   : > { %v2082_v41 = vrot.slane %v2074_v34, %v3076_v8  ;;  %v2089_v10 = vrot.slane %v2075_v26, %v3076_v8  ;;  %v2006_v52 = vcombine.low %v1998_v18, %v2002_v37  ;;  %v2007_v32 = vcombine.high %v1998_v18, %v2002_v37 }
 0x604   : > { %v2014_v44 = vrot.slane %v2006_v52, %v3076_v8  ;;  %v2021_v29 = vrot.slane %v2007_v32, %v3076_v8 }
 0x60d   : > { %v2478_v49 = vpop.f32.mrf.mxu1 }
 0x60e   : > { %v2005_v51 = vmul.f32 %v2478_v49, %v1997_v33 }
 0x60f   : > { %v1981_v21 = vpop.f32.mrf.mxu1 }
 0x610   : > { %v2090_v31 = vcombine.low %v2001_v50, %v2005_v51  ;;  %v2091_v55 = vcombine.high %v2001_v50, %v2005_v51  ;;  %v2004_v14 = vmul.f32 %v1996_v40, %v1981_v21 }
 0x612   : > { %v2098_v38 = vrot.slane %v2090_v31, %v3076_v8  ;;  %v2105_v53 = vrot.slane %v2091_v55, %v3076_v8  ;;  %v2022_v9 = vcombine.low %v2000_v62, %v2004_v14  ;;  %v2023_v39 = vcombine.high %v2000_v62, %v2004_v14 }
 0x614   : > { %v2106_v47 = vcombine.low %v2082_v41, %v2098_v38  ;;  %v2107_v43 = vcombine.high %v2082_v41, %v2098_v38  ;;  %v2122_v4 = vcombine.low %v2089_v10, %v2105_v53  ;;  %v2123_v45 = vcombine.high %v2089_v10, %v2105_v53 }
 0x615   : > { %v2030_v61 = vrot.slane %v2022_v9, %v3076_v8  ;;  %v2037_v7 = vrot.slane %v2023_v39, %v3076_v8  ;;  %v2843_v8 = vmov 0.0  }
 0x616   : > { %v2114_v24 = vrot.slane %v2106_v47, %v3086_v19  ;;  %v2121_v54 = vrot.slane %v2107_v43, %v3086_v19  ;;  %v2130_v46 = vrot.slane %v2122_v4, %v3086_v19  ;;  %v2137_v56 = vrot.slane %v2123_v45, %v3086_v19 }
 0x617   : > { %v2038_v58 = vcombine.low %v2014_v44, %v2030_v61  ;;  %v2039_v27 = vcombine.high %v2014_v44, %v2030_v61  ;;  %v2054_v11 = vcombine.low %v2021_v29, %v2037_v7  ;;  %v2055_v15 = vcombine.high %v2021_v29, %v2037_v7 }
 0x618   : > { %v2138_v35 = vcombine.high %v2114_v24, %v2843_v8  ;;  %v2139_v59 = vcombine.high %v2121_v54, %v2843_v8  ;;  %v2140_v25 = vcombine.high %v2130_v46, %v2843_v8  ;;  %v2141_v60 = vcombine.high %v2137_v56, %v2843_v8  ;;  %2151 = vst.msk [vmem:[%s3416_s7 + $0x20] sm:$0xf] %vm2142_vm6, %v2114_v24 }
 0x619   : > { %2153 = vst.msk [vmem:[%s3416_s7 + $0x28] sm:$0xf] %vm2142_vm6, %v2121_v54  ;;  %2155 = vst.msk [vmem:[%s3416_s7 + $0x30] sm:$0xf] %vm2142_vm6, %v2130_v46  ;;  %v2046_v3 = vrot.slane %v2038_v58, %v3086_v19  ;;  %v2053_v63 = vrot.slane %v2039_v27, %v3086_v19  ;;  %v2062_v42 = vrot.slane %v2054_v11, %v3086_v19 }
 0x61a   : > { %2157 = vst.msk [vmem:[%s3416_s7 + $0x38] sm:$0xf] %vm2142_vm6, %v2137_v56  ;;  %v2069_v48 = vrot.slane %v2055_v15, %v3086_v19  ;;  %2152 = vst.msk [vmem:[%s3416_s7 + $0x24] sm:$0xf] %vm2142_vm6, %v2138_v35 }
 0x61b   : > { %2154 = vst.msk [vmem:[%s3416_s7 + $0x2c] sm:$0xf] %vm2142_vm6, %v2139_v59  ;;  %2156 = vst.msk [vmem:[%s3416_s7 + $0x34] sm:$0xf] %vm2142_vm6, %v2140_v25  ;;  %v2070_v19 = vcombine.high %v2046_v3, %v2843_v8  ;;  %v2071_v0 = vcombine.high %v2053_v63, %v2843_v8  ;;  %v2072_v5 = vcombine.high %v2062_v42, %v2843_v8 }
 0x61c   : > { %2158 = vst.msk [vmem:[%s3416_s7 + $0x3c] sm:$0xf] %vm2142_vm6, %v2141_v60  ;;  %v2073_v20 = vcombine.high %v2069_v48, %v2843_v8  ;;  %2143 = vst.msk [vmem:[%s3416_s7] sm:$0xf] %vm2142_vm6, %v2046_v3 }
 0x61d   : > { %2145 = vst.msk [vmem:[%s3416_s7 + $0x8] sm:$0xf] %vm2142_vm6, %v2053_v63  ;;  %2147 = vst.msk [vmem:[%s3416_s7 + $0x10] sm:$0xf] %vm2142_vm6, %v2062_v42 }
 0x61e   : > { %2149 = vst.msk [vmem:[%s3416_s7 + $0x18] sm:$0xf] %vm2142_vm6, %v2069_v48  ;;  %2144 = vst.msk [vmem:[%s3416_s7 + $0x4] sm:$0xf] %vm2142_vm6, %v2070_v19 }
 0x61f   : > { %2146 = vst.msk [vmem:[%s3416_s7 + $0xc] sm:$0xf] %vm2142_vm6, %v2071_v0  ;;  %2148 = vst.msk [vmem:[%s3416_s7 + $0x14] sm:$0xf] %vm2142_vm6, %v2072_v5 }
 0x620   : > { %2150 = vst.msk [vmem:[%s3416_s7 + $0x1c] sm:$0xf] %vm2142_vm6, %v2073_v20 }
 0x621   : > { %2778 = shalt.err (!%p2775_p9)
}
 0x622   : > { %s2779_s9 = scalar_lea.hbm %s3442_s11, 1024  ;;  %s2783_s26 = scalar_lea.hbm %s3506_s3, 2048 }
 0x623   : > { %p2780_p12 = scmp.ne.s32.totalorder %s3442_s11, %s2779_s9  ;;  %p2784_p5 = scmp.lt.s32.totalorder %s3442_s11, %s3506_s3 }
 0x624   : > { %p2785_p1 = scmp.lt.s32.totalorder %s2783_s26, %s2779_s9 }
 0x625   : > { %p2781_p3 = pnand %p2780_p12, %p3526_p11 }
 0x626   : > { %p2786_p7 = por %p2785_p1, %p2784_p5 }
 0x627   : > { %p2782_p4 = pneg %p2781_p3 }
 0x629   : > { %p2787_p13 = pnand %p2786_p7, %p2782_p4 }
 0x62b   : > { %2790 = shalt.err (!%p2787_p13)
}
 0x62c   : > { %s2845_s30 = smov 64   ;;  %s2846_s4 = smov 4  }
 0x62d   : > { %2485 = dma.vmem_to_hbm [thread:$0]  (%p3526_p11), %s3444_s27, 1024, %s3442_s11, %s2160_s25, %s2845_s30, %s2845_s30, %s2846_s4  }
 0x62e PF: > { %s2188_s22 = sand.u32 1, %s2821_s12   ;;  %p3527_p8 = scmp.ne.s32.totalorder %s3517_s24, 0 }
 0x62f   : > { %p3528_p10 = scmp.ge.s32.totalorder %s2833_s15, 2  ;;  %s2189_s21 = scalar_lea.sflag [#allocation4], %s2188_s22 }
 0x631   : > { %p2498_p0 = pnand %p3528_p10, %p3527_p8 }
 0x633   : > { %p2499_p2 = pneg %p2498_p0 }
 0x635   : > { %2816 = dma.done.wait (%p2499_p2), %s2189_s21, 1024  }
 0x636   : > { %2818 = vsyncadd (%p2499_p2), %s2189_s21, 4294966272  ;;  %s3529_s7 = sld [smem:[#allocation12_spill]]  ;;  %p19_p6 = scmp.ge.s32.totalorder %s2892_s18, 4  }
 0x637   : > { %s3530_s12 = smov %s2825_s13  ;;  %s3531_s13 = smov %s2829_s14 }
 0x638   : > { %s3533_s15 = smov %s2892_s18  ;;  %21 = sbr.rel (!%p19_p6) target bundleno = 9 (0x9), region = 101 }
 0x63c   : > { %s3532_s14 = smov %s3529_s7 }
 0x63d   :  { %2194 = vsyncpa [#allocation3], 1 }
 0x63e   :  { %2196 = vsyncpa [#allocation3 + $0x1], 1 }
 0x63f   :  { %2197 = vsyncpa [#allocation6], 1 }
 0x640   :  { %2199 = vsyncpa [#allocation6 + $0x1], 1 }
 0x641   :  { %2200 = vsyncpa [#allocation4], 1 }
 0x642   :  { %2202 = vsyncpa [#allocation4 + $0x1], 1 }

</bundles_post_ra>
